<compile_context>
chip_gen: v6e
topology: v6e:2x2x1
jax: 0.10.0
libtpu: 0.0.40
codegen_flags: <defaults>
</compile_context>

<pallas_src>
import functools
import math

import jax
import jax.numpy as jnp
from jax.experimental import pallas as pl
from jax.experimental.pallas import tpu as pltpu

GRID_SIZE = 5
SPLINE_ORDER = 3
GRID_RANGE = (-1.0, 1.0)
NUM_COEFF = GRID_SIZE + SPLINE_ORDER      # 8 spline bases per input feature
FUSED = NUM_COEFF + 1                     # + SiLU base branch
PARAM_DTYPE = jnp.bfloat16                # MXU-native weight / slab dtype


def _vmem_budget_bytes():
    """Generation-aware VMEM request (~75% of per-core VMEM, <= 96 MiB)."""
    try:
        cap = int(pltpu.get_tpu_info().vmem_capacity_bytes)
    except Exception:
        cap = 64 << 20                    # conservative (v7x-sized core)
    return max(32 << 20, min(3 * cap // 4, 96 << 20))


_VMEM_BUDGET = _vmem_budget_bytes()
_BIG_VMEM = _VMEM_BUDGET >= (64 << 20)    # v5e / v6e (128 MiB physical)
MAX_B_TILE = 256 if _BIG_VMEM else 128
MAX_IN_TILE = 512
MAX_OUT_TILE = 1024 if _BIG_VMEM else 512


def _grid_knots():
    """Knot vector used by KANLinear (identical for every input feature)."""
    h = (GRID_RANGE[1] - GRID_RANGE[0]) / GRID_SIZE
    return [h * t + GRID_RANGE[0]
            for t in range(-SPLINE_ORDER, GRID_SIZE + SPLINE_ORDER + 1)]  # 12


def _round_up(v, m):
    return ((v + m - 1) // m) * m


def _batch_tiles(batch):
    n = max(1, -(-batch // MAX_B_TILE))        # number of batch tiles
    b_tile = _round_up(-(-batch // n), 8)
    b_pad = _round_up(batch, b_tile)
    return b_tile, b_pad


def _feature_tiles(in_f, out_f):
    in_al = _round_up(in_f, 128)               # 128-lane aligned basis chunks
    if in_al <= MAX_IN_TILE:
        in_tile, in_pad = in_al, in_al
    else:
        in_tile = MAX_IN_TILE
        in_pad = _round_up(in_f, MAX_IN_TILE)
    out_al = _round_up(out_f, 128)
    if out_al <= MAX_OUT_TILE:
        out_tile, out_pad = out_al, out_al
    else:
        out_tile = MAX_OUT_TILE
        out_pad = _round_up(out_f, MAX_OUT_TILE)
    return in_tile, in_pad, out_tile, out_pad


# ---------------------------------------------------------------------------
# In-kernel fused activation slab: [SiLU(x) | B_0(x) | ... | B_7(x)]
# ---------------------------------------------------------------------------
def _fused_activation_slab(xf, knots, out_dtype):
    """Build the (b, FUSED*in) slab in `out_dtype` (each chunk 128-aligned).

    Degree-0 bases come from 12 step functions (ge[m] - ge[m+1]); the
    Cox-de Boor recursion is fully unrolled with Python-folded reciprocals
    (no divides on the VPU).  Boundary convention (half-open intervals)
    matches the PyTorch reference exactly.
    """
    silu = xf * jax.nn.sigmoid(xf)
    ge = [(xf >= k).astype(jnp.float32) for k in knots]            # 12 steps
    bases = [ge[m] - ge[m + 1] for m in range(len(knots) - 1)]     # 11 deg-0
    for d in range(1, SPLINE_ORDER + 1):
        nxt = []
        for m in range(len(bases) - 1):
            inv_l = 1.0 / (knots[m + d] - knots[m])
            inv_r = 1.0 / (knots[m + d + 1] - knots[m + 1])
            nxt.append((xf - knots[m]) * inv_l * bases[m]
                       + (knots[m + d + 1] - xf) * inv_r * bases[m + 1])
        bases = nxt                                                # 8 arrays
    chunks = [silu.astype(out_dtype)] + [b.astype(out_dtype) for b in bases]
    return jnp.concatenate(chunks, axis=-1)


# ---------------------------------------------------------------------------
# Kernels
# ---------------------------------------------------------------------------
def kan_tile_kernel_nk1(x_ref, w_ref, o_ref, act_ref, *, knots):
    """One (i, j) tile; in_f fits a single in-tile (n_k == 1, common case).

    The activation slab depends only on the batch tile, so it is cached in a
    VMEM scratch (bf16) and recomputed only when the out-tile index resets.
    """
    @pl.when(pl.program_id(1) == 0)
    def _():
        act_ref[...] = _fused_activation_slab(
            x_ref[...].astype(jnp.float32), knots, act_ref.dtype)

    o_ref[...] = jnp.dot(act_ref[...], w_ref[...],
                         preferred_element_type=jnp.float32).astype(o_ref.dtype)


def kan_tile_kernel_nkN(x_ref, w_ref, o_ref, acc_ref, *, knots):
    """One (i, j, k) tile with reduction over in-tiles (in_f > MAX_IN_TILE)."""
    k = pl.program_id(2)

    @pl.when(k == 0)
    def _():
        acc_ref[...] = jnp.zeros_like(acc_ref)

    act = _fused_activation_slab(x_ref[...].astype(jnp.float32), knots,
                                 w_ref.dtype)
    acc_ref[...] += jnp.dot(act, w_ref[0], preferred_element_type=jnp.float32)

    @pl.when(k == pl.num_programs(2) - 1)
    def _():
        o_ref[...] = acc_ref[...].astype(o_ref.dtype)


def _make_fused_stack_kernel(num_layers, knots):
    """Whole stack in one kernel; intermediate activations stay on-chip."""
    def kernel(*refs):
        x_ref = refs[0]
        w_refs = refs[1:1 + num_layers]
        o_ref = refs[1 + num_layers]
        act = x_ref[...].astype(jnp.float32)
        for w_ref in w_refs:
            slab = _fused_activation_slab(act, knots, w_ref.dtype)
            act = jnp.dot(slab, w_ref[...], preferred_element_type=jnp.float32)
        o_ref[...] = act.astype(o_ref.dtype)
    return kernel


# ---------------------------------------------------------------------------
# Weight packing (done ONCE at init)
# ---------------------------------------------------------------------------
def prepare_kan_layer(base_weight, spline_weight, spline_scaler,
                      dtype=PARAM_DTYPE):
    """Fold scaler, transpose, zero-pad (128-aligned), pack fused slab, cast.

    Per in-tile the packed rows are [Wb ; Ws_c0 ; ... ; Ws_c7], matching the
    kernel's concat([SiLU, B_0, ..., B_7]) activation layout.  Padded weight
    rows/cols are zero, so padded features/batch contribute exactly zero.
    """
    out_f, in_f = base_weight.shape
    in_tile, in_pad, out_tile, out_pad = _feature_tiles(in_f, out_f)

    ws = spline_weight * spline_scaler[..., None]     # (out, in, coeff)  f32
    ws = jnp.transpose(ws, (2, 1, 0))                 # (coeff, in, out)
    wb = base_weight.T                                # (in, out)

    wb = jnp.pad(wb, ((0, in_pad - in_f), (0, out_pad - out_f)))
    ws = jnp.pad(ws, ((0, 0), (0, in_pad - in_f), (0, out_pad - out_f)))

    n_k = in_pad // in_tile
    wb_t = wb.reshape(n_k, in_tile, out_pad)
    ws_t = ws.reshape(NUM_COEFF, n_k, in_tile, out_pad)
    ws_t = jnp.transpose(ws_t, (1, 0, 2, 3)).reshape(
        n_k, NUM_COEFF * in_tile, out_pad)
    w_fused = jnp.concatenate([wb_t, ws_t], axis=1).astype(dtype)
    if n_k == 1:
        w_fused = w_fused.reshape(FUSED * in_tile, out_pad)        # 2-D slab

    return dict(w=w_fused, in_f=in_f, out_f=out_f, in_tile=in_tile,
                in_pad=in_pad, out_tile=out_tile, out_pad=out_pad,
                n_k=n_k, n_n=out_pad // out_tile)


# ---------------------------------------------------------------------------
# Forward wrappers
# ---------------------------------------------------------------------------
def _match_width(x, width):
    cur = x.shape[1]
    if cur < width:
        return jnp.pad(x, ((0, 0), (0, width - cur)))
    if cur > width:
        return x[:, :width]        # trailing cols are zero-padded features
    return x


def _kan_layer_padded(x, layer, b_tile, knots):
    """(b_pad, >=in_f) padded activations -> (b_pad, out_pad)."""
    b_pad = x.shape[0]
    x = _match_width(x, layer["in_pad"])
    n_m = b_pad // b_tile
    in_tile, out_tile = layer["in_tile"], layer["out_tile"]
    n_n, n_k = layer["n_n"], layer["n_k"]
    w = layer["w"]

    if n_k == 1:
        kernel = functools.partial(kan_tile_kernel_nk1, knots=knots)
        return pl.pallas_call(
            kernel,
            out_shape=jax.ShapeDtypeStruct((b_pad, layer["out_pad"]), x.dtype),
            grid=(n_m, n_n),
            in_specs=[
                pl.BlockSpec((b_tile, in_tile), lambda i, j: (i, 0)),
                pl.BlockSpec((FUSED * in_tile, out_tile), lambda i, j: (0, j)),
            ],
            out_specs=pl.BlockSpec((b_tile, out_tile), lambda i, j: (i, j)),
            scratch_shapes=[pltpu.VMEM((b_tile, FUSED * in_tile), w.dtype)],
            compiler_params=pltpu.CompilerParams(
                dimension_semantics=("parallel", "arbitrary"),
                vmem_limit_bytes=_VMEM_BUDGET),
        )(x, w)

    kernel = functools.partial(kan_tile_kernel_nkN, knots=knots)
    return pl.pallas_call(
        kernel,
        out_shape=jax.ShapeDtypeStruct((b_pad, layer["out_pad"]), x.dtype),
        grid=(n_m, n_n, n_k),
        in_specs=[
            pl.BlockSpec((b_tile, in_tile), lambda i, j, k: (i, k)),
            pl.BlockSpec((1, FUSED * in_tile, out_tile),
                         lambda i, j, k: (k, 0, j)),
        ],
        out_specs=pl.BlockSpec((b_tile, out_tile), lambda i, j, k: (i, j)),
        scratch_shapes=[pltpu.VMEM((b_tile, out_tile), jnp.float32)],
        compiler_params=pltpu.CompilerParams(
            dimension_semantics=("parallel", "parallel", "arbitrary"),
            vmem_limit_bytes=_VMEM_BUDGET),
    )(x, w)


def _can_fuse_stack(prepped, b_tile):
    """All layers single-tile in both feature dims and working set fits VMEM."""
    total = 0
    for lay in prepped:
        if lay["n_k"] != 1 or lay["n_n"] != 1:
            return False
        total += 2 * lay["w"].size * lay["w"].dtype.itemsize   # double-buffer
    for a, b in zip(prepped[:-1], prepped[1:]):
        if a["out_f"] != b["in_f"] or a["out_pad"] != b["in_pad"]:
            return False
    widths = [prepped[0]["in_pad"]] + [l["out_pad"] for l in prepped]
    live = max(b_tile * (widths[i] * 4 + FUSED * widths[i] * 2
                         + widths[i + 1] * 4) for i in range(len(prepped)))
    total += live + 2 * b_tile * (widths[0] + widths[-1]) * 4
    return total <= _VMEM_BUDGET // 2


def _fused_stack_forward(x, prepped, b_tile, knots):
    b_pad = x.shape[0]
    x = _match_width(x, prepped[0]["in_pad"])
    out_pad = prepped[-1]["out_pad"]
    n_m = b_pad // b_tile
    # TODO(synk): for n_m == 1 on v7x the second TensorCore idles (batch too
    # small to split across cores).
    kernel = _make_fused_stack_kernel(len(prepped), knots)
    in_specs = [pl.BlockSpec((b_tile, prepped[0]["in_pad"]), lambda i: (i, 0))]
    for lay in prepped:
        r, c = lay["w"].shape
        in_specs.append(pl.BlockSpec((r, c), lambda i: (0, 0)))
    return pl.pallas_call(
        kernel,
        out_shape=jax.ShapeDtypeStruct((b_pad, out_pad), x.dtype),
        grid=(n_m,),
        in_specs=in_specs,
        out_specs=pl.BlockSpec((b_tile, out_pad), lambda i: (i, 0)),
        compiler_params=pltpu.CompilerParams(
            dimension_semantics=("parallel",),
            vmem_limit_bytes=_VMEM_BUDGET),
    )(x, *[lay["w"] for lay in prepped])


def bkan_forward(x, prepped, force_tiled=False):
    B = x.shape[0]
    knots = _grid_knots()
    b_tile, b_pad = _batch_tiles(B)
    if b_pad != B:
        x = jnp.pad(x, ((0, b_pad - B), (0, 0)))

    if (not force_tiled) and _can_fuse_stack(prepped, b_tile):
        out = _fused_stack_forward(x, prepped, b_tile, knots)
    else:
        # TODO(synk): partial-stack fusion for mixed/huge layer sizes.
        out = x
        for lay in prepped:               # activations stay padded in between
            out = _kan_layer_padded(out, lay, b_tile, knots)
    return out[:B, :prepped[-1]["out_f"]]


# ---------------------------------------------------------------------------
# Parameter construction (deterministic, synthetic — mirrors KANLinear shapes)
# ---------------------------------------------------------------------------
def init_bkan_params(key, layers_hidden):
    params = []
    for in_f, out_f in zip(layers_hidden, layers_hidden[1:]):
        key, k1, k2, k3 = jax.random.split(key, 4)
        bound = math.sqrt(6.0 / ((1.0 + 5.0) * in_f))
        base_weight = jax.random.uniform(
            k1, (out_f, in_f), jnp.float32, -bound, bound)
        spline_weight = jax.random.uniform(
            k2, (out_f, in_f, GRID_SIZE + SPLINE_ORDER), jnp.float32, -0.1, 0.1)
        spline_scaler = jax.random.uniform(
            k3, (out_f, in_f), jnp.float32, -bound, bound)
        params.append((base_weight, spline_weight, spline_scaler))
    return params


# ---------------------------------------------------------------------------
# Pure-JAX f32 reference (mirrors the PyTorch math exactly)
# ---------------------------------------------------------------------------
def _ref_layer(x, base_weight, spline_weight, spline_scaler):
    knots = jnp.asarray(_grid_knots(), jnp.float32)
    base_out = (x * jax.nn.sigmoid(x)) @ base_weight.T
    xe = x[:, :, None]
    bases = ((xe >= knots[:-1]) & (xe < knots[1:])).astype(x.dtype)
    for k in range(1, SPLINE_ORDER + 1):
        bases = ((xe - knots[:-(k + 1)]) / (knots[k:-1] - knots[:-(k + 1)])
                 * bases[:, :, :-1]
                 + (knots[k + 1:] - xe) / (knots[k + 1:] - knots[1:-k])
                 * bases[:, :, 1:])
    sw = spline_weight * spline_scaler[..., None]
    spline_out = bases.reshape(x.shape[0], -1) @ sw.reshape(sw.shape[0], -1).T
    return base_out + spline_out


def bkan_forward_ref(x, params):
    for p in params:
        x = _ref_layer(x, *p)
    return x


if __name__ == "__main__":
    layers_hidden = [32, 64, 16]
    batch = 8

    key = jax.random.PRNGKey(0)
    kx, kp = jax.random.split(key)
    x = jax.random.uniform(kx, (batch, layers_hidden[0]), jnp.float32,
                           -1.0, 1.0)
    params = init_bkan_params(kp, layers_hidden)

    # One-time weight packing (bf16 fused slabs), hoisted out of forward.
    prepped = [prepare_kan_layer(*p) for p in params]

    ref = bkan_forward_ref(x, params)

    # Whole-stack fused kernel (default path at these shapes).
    out = jax.block_until_ready(bkan_forward(x, prepped))
    assert out.shape == (batch, layers_hidden[-1])
    err = float(jnp.max(jnp.abs(out - ref)))
    # bf16 weight/slab packing -> looser tolerance vs. the f32 reference.
    assert jnp.allclose(out, ref, atol=3e-2, rtol=3e-2), ("fused", err)

    # Tiled per-layer path (used automatically for large layers).
    out_t = jax.block_until_ready(bkan_forward(x, prepped, force_tiled=True))
    err_t = float(jnp.max(jnp.abs(out_t - ref)))
    assert jnp.allclose(out_t, ref, atol=3e-2, rtol=3e-2), ("tiled", err_t)

    print("KERNEL_OK")
</pallas_src>

<mosaic_0001>
module attributes {stable_mosaic.version = 11 : i64} {
  func.func @kernel(%arg0: i32, %arg1: memref<8x128xf32, #tpu.memory_space<vmem>>, %arg2: memref<1152x128xbf16, #tpu.memory_space<vmem>>, %arg3: memref<1152x128xbf16, #tpu.memory_space<vmem>>, %arg4: memref<8x128xf32, #tpu.memory_space<vmem>>) attributes {dimension_semantics = [#tpu.dimension_semantics<parallel>], iteration_bounds = array<i64: 1>, scalar_prefetch = 0 : i64, scratch_operands = 0 : i64, tpu.core_type = #tpu.core_type<tc>, window_params = [{transform_indices = @transform_0, window_bounds = array<i64: 8, 128>}, {pipeline_mode = #tpu.pipeline_mode<synchronous>, transform_indices = @transform_1, window_bounds = array<i64: 1152, 128>}, {pipeline_mode = #tpu.pipeline_mode<synchronous>, transform_indices = @transform_2, window_bounds = array<i64: 1152, 128>}, {transform_indices = @transform_3, window_bounds = array<i64: 8, 128>}]} {
    %c0 = arith.constant 0 : index
    %c0_0 = arith.constant 0 : index
    %0 = vector.load %arg1[%c0, %c0_0] : memref<8x128xf32, #tpu.memory_space<vmem>>, vector<8x128xf32>
    %1 = arith.negf %0 : vector<8x128xf32>
    %2 = math.exp %1 : vector<8x128xf32>
    %cst = arith.constant 1.000000e+00 : f32
    %3 = vector.broadcast %cst : f32 to vector<8x128xf32>
    %4 = arith.addf %3, %2 : vector<8x128xf32>
    %5 = arith.divf %3, %4 : vector<8x128xf32>
    %6 = arith.mulf %0, %5 : vector<8x128xf32>
    %cst_1 = arith.constant -2.200000e+00 : f32
    %7 = vector.broadcast %cst_1 : f32 to vector<8x128xf32>
    %8 = arith.cmpf oge, %0, %7 : vector<8x128xf32>
    %9 = arith.extui %8 : vector<8x128xi1> to vector<8x128xi32>
    %10 = arith.sitofp %9 : vector<8x128xi32> to vector<8x128xf32>
    %cst_2 = arith.constant -1.800000e+00 : f32
    %11 = vector.broadcast %cst_2 : f32 to vector<8x128xf32>
    %12 = arith.cmpf oge, %0, %11 : vector<8x128xf32>
    %13 = arith.extui %12 : vector<8x128xi1> to vector<8x128xi32>
    %14 = arith.sitofp %13 : vector<8x128xi32> to vector<8x128xf32>
    %cst_3 = arith.constant -1.400000e+00 : f32
    %15 = vector.broadcast %cst_3 : f32 to vector<8x128xf32>
    %16 = arith.cmpf oge, %0, %15 : vector<8x128xf32>
    %17 = arith.extui %16 : vector<8x128xi1> to vector<8x128xi32>
    %18 = arith.sitofp %17 : vector<8x128xi32> to vector<8x128xf32>
    %cst_4 = arith.constant -1.000000e+00 : f32
    %19 = vector.broadcast %cst_4 : f32 to vector<8x128xf32>
    %20 = arith.cmpf oge, %0, %19 : vector<8x128xf32>
    %21 = arith.extui %20 : vector<8x128xi1> to vector<8x128xi32>
    %22 = arith.sitofp %21 : vector<8x128xi32> to vector<8x128xf32>
    %cst_5 = arith.constant -6.000000e-01 : f32
    %23 = vector.broadcast %cst_5 : f32 to vector<8x128xf32>
    %24 = arith.cmpf oge, %0, %23 : vector<8x128xf32>
    %25 = arith.extui %24 : vector<8x128xi1> to vector<8x128xi32>
    %26 = arith.sitofp %25 : vector<8x128xi32> to vector<8x128xf32>
    %cst_6 = arith.constant -2.000000e-01 : f32
    %27 = vector.broadcast %cst_6 : f32 to vector<8x128xf32>
    %28 = arith.cmpf oge, %0, %27 : vector<8x128xf32>
    %29 = arith.extui %28 : vector<8x128xi1> to vector<8x128xi32>
    %30 = arith.sitofp %29 : vector<8x128xi32> to vector<8x128xf32>
    %cst_7 = arith.constant 2.000000e-01 : f32
    %31 = vector.broadcast %cst_7 : f32 to vector<8x128xf32>
    %32 = arith.cmpf oge, %0, %31 : vector<8x128xf32>
    %33 = arith.extui %32 : vector<8x128xi1> to vector<8x128xi32>
    %34 = arith.sitofp %33 : vector<8x128xi32> to vector<8x128xf32>
    %cst_8 = arith.constant 6.000000e-01 : f32
    %35 = vector.broadcast %cst_8 : f32 to vector<8x128xf32>
    %36 = arith.cmpf oge, %0, %35 : vector<8x128xf32>
    %37 = arith.extui %36 : vector<8x128xi1> to vector<8x128xi32>
    %38 = arith.sitofp %37 : vector<8x128xi32> to vector<8x128xf32>
    %cst_9 = arith.constant 1.000000e+00 : f32
    %39 = vector.broadcast %cst_9 : f32 to vector<8x128xf32>
    %40 = arith.cmpf oge, %0, %39 : vector<8x128xf32>
    %41 = arith.extui %40 : vector<8x128xi1> to vector<8x128xi32>
    %42 = arith.sitofp %41 : vector<8x128xi32> to vector<8x128xf32>
    %cst_10 = arith.constant 1.400000e+00 : f32
    %43 = vector.broadcast %cst_10 : f32 to vector<8x128xf32>
    %44 = arith.cmpf oge, %0, %43 : vector<8x128xf32>
    %45 = arith.extui %44 : vector<8x128xi1> to vector<8x128xi32>
    %46 = arith.sitofp %45 : vector<8x128xi32> to vector<8x128xf32>
    %cst_11 = arith.constant 1.800000e+00 : f32
    %47 = vector.broadcast %cst_11 : f32 to vector<8x128xf32>
    %48 = arith.cmpf oge, %0, %47 : vector<8x128xf32>
    %49 = arith.extui %48 : vector<8x128xi1> to vector<8x128xi32>
    %50 = arith.sitofp %49 : vector<8x128xi32> to vector<8x128xf32>
    %cst_12 = arith.constant 2.200000e+00 : f32
    %51 = vector.broadcast %cst_12 : f32 to vector<8x128xf32>
    %52 = arith.cmpf oge, %0, %51 : vector<8x128xf32>
    %53 = arith.extui %52 : vector<8x128xi1> to vector<8x128xi32>
    %54 = arith.sitofp %53 : vector<8x128xi32> to vector<8x128xf32>
    %55 = arith.subf %10, %14 : vector<8x128xf32>
    %56 = arith.subf %14, %18 : vector<8x128xf32>
    %57 = arith.subf %18, %22 : vector<8x128xf32>
    %58 = arith.subf %22, %26 : vector<8x128xf32>
    %59 = arith.subf %26, %30 : vector<8x128xf32>
    %60 = arith.subf %30, %34 : vector<8x128xf32>
    %61 = arith.subf %34, %38 : vector<8x128xf32>
    %62 = arith.subf %38, %42 : vector<8x128xf32>
    %63 = arith.subf %42, %46 : vector<8x128xf32>
    %64 = arith.subf %46, %50 : vector<8x128xf32>
    %65 = arith.subf %50, %54 : vector<8x128xf32>
    %cst_13 = arith.constant -2.200000e+00 : f32
    %66 = vector.broadcast %cst_13 : f32 to vector<8x128xf32>
    %67 = arith.subf %0, %66 : vector<8x128xf32>
    %cst_14 = arith.constant 2.500000e+00 : f32
    %68 = vector.broadcast %cst_14 : f32 to vector<8x128xf32>
    %69 = arith.mulf %67, %68 : vector<8x128xf32>
    %70 = arith.mulf %69, %55 : vector<8x128xf32>
    %cst_15 = arith.constant -1.400000e+00 : f32
    %71 = vector.broadcast %cst_15 : f32 to vector<8x128xf32>
    %72 = arith.subf %71, %0 : vector<8x128xf32>
    %cst_16 = arith.constant 2.500000e+00 : f32
    %73 = vector.broadcast %cst_16 : f32 to vector<8x128xf32>
    %74 = arith.mulf %72, %73 : vector<8x128xf32>
    %75 = arith.mulf %74, %56 : vector<8x128xf32>
    %76 = arith.addf %70, %75 : vector<8x128xf32>
    %cst_17 = arith.constant -1.800000e+00 : f32
    %77 = vector.broadcast %cst_17 : f32 to vector<8x128xf32>
    %78 = arith.subf %0, %77 : vector<8x128xf32>
    %cst_18 = arith.constant 2.500000e+00 : f32
    %79 = vector.broadcast %cst_18 : f32 to vector<8x128xf32>
    %80 = arith.mulf %78, %79 : vector<8x128xf32>
    %81 = arith.mulf %80, %56 : vector<8x128xf32>
    %cst_19 = arith.constant -1.000000e+00 : f32
    %82 = vector.broadcast %cst_19 : f32 to vector<8x128xf32>
    %83 = arith.subf %82, %0 : vector<8x128xf32>
    %cst_20 = arith.constant 2.500000e+00 : f32
    %84 = vector.broadcast %cst_20 : f32 to vector<8x128xf32>
    %85 = arith.mulf %83, %84 : vector<8x128xf32>
    %86 = arith.mulf %85, %57 : vector<8x128xf32>
    %87 = arith.addf %81, %86 : vector<8x128xf32>
    %cst_21 = arith.constant -1.400000e+00 : f32
    %88 = vector.broadcast %cst_21 : f32 to vector<8x128xf32>
    %89 = arith.subf %0, %88 : vector<8x128xf32>
    %cst_22 = arith.constant 2.500000e+00 : f32
    %90 = vector.broadcast %cst_22 : f32 to vector<8x128xf32>
    %91 = arith.mulf %89, %90 : vector<8x128xf32>
    %92 = arith.mulf %91, %57 : vector<8x128xf32>
    %cst_23 = arith.constant -6.000000e-01 : f32
    %93 = vector.broadcast %cst_23 : f32 to vector<8x128xf32>
    %94 = arith.subf %93, %0 : vector<8x128xf32>
    %cst_24 = arith.constant 2.500000e+00 : f32
    %95 = vector.broadcast %cst_24 : f32 to vector<8x128xf32>
    %96 = arith.mulf %94, %95 : vector<8x128xf32>
    %97 = arith.mulf %96, %58 : vector<8x128xf32>
    %98 = arith.addf %92, %97 : vector<8x128xf32>
    %cst_25 = arith.constant -1.000000e+00 : f32
    %99 = vector.broadcast %cst_25 : f32 to vector<8x128xf32>
    %100 = arith.subf %0, %99 : vector<8x128xf32>
    %cst_26 = arith.constant 2.500000e+00 : f32
    %101 = vector.broadcast %cst_26 : f32 to vector<8x128xf32>
    %102 = arith.mulf %100, %101 : vector<8x128xf32>
    %103 = arith.mulf %102, %58 : vector<8x128xf32>
    %cst_27 = arith.constant -2.000000e-01 : f32
    %104 = vector.broadcast %cst_27 : f32 to vector<8x128xf32>
    %105 = arith.subf %104, %0 : vector<8x128xf32>
    %cst_28 = arith.constant 2.500000e+00 : f32
    %106 = vector.broadcast %cst_28 : f32 to vector<8x128xf32>
    %107 = arith.mulf %105, %106 : vector<8x128xf32>
    %108 = arith.mulf %107, %59 : vector<8x128xf32>
    %109 = arith.addf %103, %108 : vector<8x128xf32>
    %cst_29 = arith.constant -6.000000e-01 : f32
    %110 = vector.broadcast %cst_29 : f32 to vector<8x128xf32>
    %111 = arith.subf %0, %110 : vector<8x128xf32>
    %cst_30 = arith.constant 2.500000e+00 : f32
    %112 = vector.broadcast %cst_30 : f32 to vector<8x128xf32>
    %113 = arith.mulf %111, %112 : vector<8x128xf32>
    %114 = arith.mulf %113, %59 : vector<8x128xf32>
    %cst_31 = arith.constant 2.000000e-01 : f32
    %115 = vector.broadcast %cst_31 : f32 to vector<8x128xf32>
    %116 = arith.subf %115, %0 : vector<8x128xf32>
    %cst_32 = arith.constant 2.500000e+00 : f32
    %117 = vector.broadcast %cst_32 : f32 to vector<8x128xf32>
    %118 = arith.mulf %116, %117 : vector<8x128xf32>
    %119 = arith.mulf %118, %60 : vector<8x128xf32>
    %120 = arith.addf %114, %119 : vector<8x128xf32>
    %cst_33 = arith.constant -2.000000e-01 : f32
    %121 = vector.broadcast %cst_33 : f32 to vector<8x128xf32>
    %122 = arith.subf %0, %121 : vector<8x128xf32>
    %cst_34 = arith.constant 2.500000e+00 : f32
    %123 = vector.broadcast %cst_34 : f32 to vector<8x128xf32>
    %124 = arith.mulf %122, %123 : vector<8x128xf32>
    %125 = arith.mulf %124, %60 : vector<8x128xf32>
    %cst_35 = arith.constant 6.000000e-01 : f32
    %126 = vector.broadcast %cst_35 : f32 to vector<8x128xf32>
    %127 = arith.subf %126, %0 : vector<8x128xf32>
    %cst_36 = arith.constant 2.500000e+00 : f32
    %128 = vector.broadcast %cst_36 : f32 to vector<8x128xf32>
    %129 = arith.mulf %127, %128 : vector<8x128xf32>
    %130 = arith.mulf %129, %61 : vector<8x128xf32>
    %131 = arith.addf %125, %130 : vector<8x128xf32>
    %cst_37 = arith.constant 2.000000e-01 : f32
    %132 = vector.broadcast %cst_37 : f32 to vector<8x128xf32>
    %133 = arith.subf %0, %132 : vector<8x128xf32>
    %cst_38 = arith.constant 2.500000e+00 : f32
    %134 = vector.broadcast %cst_38 : f32 to vector<8x128xf32>
    %135 = arith.mulf %133, %134 : vector<8x128xf32>
    %136 = arith.mulf %135, %61 : vector<8x128xf32>
    %cst_39 = arith.constant 1.000000e+00 : f32
    %137 = vector.broadcast %cst_39 : f32 to vector<8x128xf32>
    %138 = arith.subf %137, %0 : vector<8x128xf32>
    %cst_40 = arith.constant 2.500000e+00 : f32
    %139 = vector.broadcast %cst_40 : f32 to vector<8x128xf32>
    %140 = arith.mulf %138, %139 : vector<8x128xf32>
    %141 = arith.mulf %140, %62 : vector<8x128xf32>
    %142 = arith.addf %136, %141 : vector<8x128xf32>
    %cst_41 = arith.constant 6.000000e-01 : f32
    %143 = vector.broadcast %cst_41 : f32 to vector<8x128xf32>
    %144 = arith.subf %0, %143 : vector<8x128xf32>
    %cst_42 = arith.constant 2.500000e+00 : f32
    %145 = vector.broadcast %cst_42 : f32 to vector<8x128xf32>
    %146 = arith.mulf %144, %145 : vector<8x128xf32>
    %147 = arith.mulf %146, %62 : vector<8x128xf32>
    %cst_43 = arith.constant 1.400000e+00 : f32
    %148 = vector.broadcast %cst_43 : f32 to vector<8x128xf32>
    %149 = arith.subf %148, %0 : vector<8x128xf32>
    %cst_44 = arith.constant 2.500000e+00 : f32
    %150 = vector.broadcast %cst_44 : f32 to vector<8x128xf32>
    %151 = arith.mulf %149, %150 : vector<8x128xf32>
    %152 = arith.mulf %151, %63 : vector<8x128xf32>
    %153 = arith.addf %147, %152 : vector<8x128xf32>
    %cst_45 = arith.constant 1.000000e+00 : f32
    %154 = vector.broadcast %cst_45 : f32 to vector<8x128xf32>
    %155 = arith.subf %0, %154 : vector<8x128xf32>
    %cst_46 = arith.constant 2.500000e+00 : f32
    %156 = vector.broadcast %cst_46 : f32 to vector<8x128xf32>
    %157 = arith.mulf %155, %156 : vector<8x128xf32>
    %158 = arith.mulf %157, %63 : vector<8x128xf32>
    %cst_47 = arith.constant 1.800000e+00 : f32
    %159 = vector.broadcast %cst_47 : f32 to vector<8x128xf32>
    %160 = arith.subf %159, %0 : vector<8x128xf32>
    %cst_48 = arith.constant 2.500000e+00 : f32
    %161 = vector.broadcast %cst_48 : f32 to vector<8x128xf32>
    %162 = arith.mulf %160, %161 : vector<8x128xf32>
    %163 = arith.mulf %162, %64 : vector<8x128xf32>
    %164 = arith.addf %158, %163 : vector<8x128xf32>
    %cst_49 = arith.constant 1.400000e+00 : f32
    %165 = vector.broadcast %cst_49 : f32 to vector<8x128xf32>
    %166 = arith.subf %0, %165 : vector<8x128xf32>
    %cst_50 = arith.constant 2.500000e+00 : f32
    %167 = vector.broadcast %cst_50 : f32 to vector<8x128xf32>
    %168 = arith.mulf %166, %167 : vector<8x128xf32>
    %169 = arith.mulf %168, %64 : vector<8x128xf32>
    %cst_51 = arith.constant 2.200000e+00 : f32
    %170 = vector.broadcast %cst_51 : f32 to vector<8x128xf32>
    %171 = arith.subf %170, %0 : vector<8x128xf32>
    %cst_52 = arith.constant 2.500000e+00 : f32
    %172 = vector.broadcast %cst_52 : f32 to vector<8x128xf32>
    %173 = arith.mulf %171, %172 : vector<8x128xf32>
    %174 = arith.mulf %173, %65 : vector<8x128xf32>
    %175 = arith.addf %169, %174 : vector<8x128xf32>
    %cst_53 = arith.constant -2.200000e+00 : f32
    %176 = vector.broadcast %cst_53 : f32 to vector<8x128xf32>
    %177 = arith.subf %0, %176 : vector<8x128xf32>
    %cst_54 = arith.constant 1.250000e+00 : f32
    %178 = vector.broadcast %cst_54 : f32 to vector<8x128xf32>
    %179 = arith.mulf %177, %178 : vector<8x128xf32>
    %180 = arith.mulf %179, %76 : vector<8x128xf32>
    %cst_55 = arith.constant -1.000000e+00 : f32
    %181 = vector.broadcast %cst_55 : f32 to vector<8x128xf32>
    %182 = arith.subf %181, %0 : vector<8x128xf32>
    %cst_56 = arith.constant 1.250000e+00 : f32
    %183 = vector.broadcast %cst_56 : f32 to vector<8x128xf32>
    %184 = arith.mulf %182, %183 : vector<8x128xf32>
    %185 = arith.mulf %184, %87 : vector<8x128xf32>
    %186 = arith.addf %180, %185 : vector<8x128xf32>
    %cst_57 = arith.constant -1.800000e+00 : f32
    %187 = vector.broadcast %cst_57 : f32 to vector<8x128xf32>
    %188 = arith.subf %0, %187 : vector<8x128xf32>
    %cst_58 = arith.constant 1.250000e+00 : f32
    %189 = vector.broadcast %cst_58 : f32 to vector<8x128xf32>
    %190 = arith.mulf %188, %189 : vector<8x128xf32>
    %191 = arith.mulf %190, %87 : vector<8x128xf32>
    %cst_59 = arith.constant -6.000000e-01 : f32
    %192 = vector.broadcast %cst_59 : f32 to vector<8x128xf32>
    %193 = arith.subf %192, %0 : vector<8x128xf32>
    %cst_60 = arith.constant 1.250000e+00 : f32
    %194 = vector.broadcast %cst_60 : f32 to vector<8x128xf32>
    %195 = arith.mulf %193, %194 : vector<8x128xf32>
    %196 = arith.mulf %195, %98 : vector<8x128xf32>
    %197 = arith.addf %191, %196 : vector<8x128xf32>
    %cst_61 = arith.constant -1.400000e+00 : f32
    %198 = vector.broadcast %cst_61 : f32 to vector<8x128xf32>
    %199 = arith.subf %0, %198 : vector<8x128xf32>
    %cst_62 = arith.constant 1.250000e+00 : f32
    %200 = vector.broadcast %cst_62 : f32 to vector<8x128xf32>
    %201 = arith.mulf %199, %200 : vector<8x128xf32>
    %202 = arith.mulf %201, %98 : vector<8x128xf32>
    %cst_63 = arith.constant -2.000000e-01 : f32
    %203 = vector.broadcast %cst_63 : f32 to vector<8x128xf32>
    %204 = arith.subf %203, %0 : vector<8x128xf32>
    %cst_64 = arith.constant 1.250000e+00 : f32
    %205 = vector.broadcast %cst_64 : f32 to vector<8x128xf32>
    %206 = arith.mulf %204, %205 : vector<8x128xf32>
    %207 = arith.mulf %206, %109 : vector<8x128xf32>
    %208 = arith.addf %202, %207 : vector<8x128xf32>
    %cst_65 = arith.constant -1.000000e+00 : f32
    %209 = vector.broadcast %cst_65 : f32 to vector<8x128xf32>
    %210 = arith.subf %0, %209 : vector<8x128xf32>
    %cst_66 = arith.constant 1.250000e+00 : f32
    %211 = vector.broadcast %cst_66 : f32 to vector<8x128xf32>
    %212 = arith.mulf %210, %211 : vector<8x128xf32>
    %213 = arith.mulf %212, %109 : vector<8x128xf32>
    %cst_67 = arith.constant 2.000000e-01 : f32
    %214 = vector.broadcast %cst_67 : f32 to vector<8x128xf32>
    %215 = arith.subf %214, %0 : vector<8x128xf32>
    %cst_68 = arith.constant 1.250000e+00 : f32
    %216 = vector.broadcast %cst_68 : f32 to vector<8x128xf32>
    %217 = arith.mulf %215, %216 : vector<8x128xf32>
    %218 = arith.mulf %217, %120 : vector<8x128xf32>
    %219 = arith.addf %213, %218 : vector<8x128xf32>
    %cst_69 = arith.constant -6.000000e-01 : f32
    %220 = vector.broadcast %cst_69 : f32 to vector<8x128xf32>
    %221 = arith.subf %0, %220 : vector<8x128xf32>
    %cst_70 = arith.constant 1.250000e+00 : f32
    %222 = vector.broadcast %cst_70 : f32 to vector<8x128xf32>
    %223 = arith.mulf %221, %222 : vector<8x128xf32>
    %224 = arith.mulf %223, %120 : vector<8x128xf32>
    %cst_71 = arith.constant 6.000000e-01 : f32
    %225 = vector.broadcast %cst_71 : f32 to vector<8x128xf32>
    %226 = arith.subf %225, %0 : vector<8x128xf32>
    %cst_72 = arith.constant 1.250000e+00 : f32
    %227 = vector.broadcast %cst_72 : f32 to vector<8x128xf32>
    %228 = arith.mulf %226, %227 : vector<8x128xf32>
    %229 = arith.mulf %228, %131 : vector<8x128xf32>
    %230 = arith.addf %224, %229 : vector<8x128xf32>
    %cst_73 = arith.constant -2.000000e-01 : f32
    %231 = vector.broadcast %cst_73 : f32 to vector<8x128xf32>
    %232 = arith.subf %0, %231 : vector<8x128xf32>
    %cst_74 = arith.constant 1.250000e+00 : f32
    %233 = vector.broadcast %cst_74 : f32 to vector<8x128xf32>
    %234 = arith.mulf %232, %233 : vector<8x128xf32>
    %235 = arith.mulf %234, %131 : vector<8x128xf32>
    %cst_75 = arith.constant 1.000000e+00 : f32
    %236 = vector.broadcast %cst_75 : f32 to vector<8x128xf32>
    %237 = arith.subf %236, %0 : vector<8x128xf32>
    %cst_76 = arith.constant 1.250000e+00 : f32
    %238 = vector.broadcast %cst_76 : f32 to vector<8x128xf32>
    %239 = arith.mulf %237, %238 : vector<8x128xf32>
    %240 = arith.mulf %239, %142 : vector<8x128xf32>
    %241 = arith.addf %235, %240 : vector<8x128xf32>
    %cst_77 = arith.constant 2.000000e-01 : f32
    %242 = vector.broadcast %cst_77 : f32 to vector<8x128xf32>
    %243 = arith.subf %0, %242 : vector<8x128xf32>
    %cst_78 = arith.constant 1.250000e+00 : f32
    %244 = vector.broadcast %cst_78 : f32 to vector<8x128xf32>
    %245 = arith.mulf %243, %244 : vector<8x128xf32>
    %246 = arith.mulf %245, %142 : vector<8x128xf32>
    %cst_79 = arith.constant 1.400000e+00 : f32
    %247 = vector.broadcast %cst_79 : f32 to vector<8x128xf32>
    %248 = arith.subf %247, %0 : vector<8x128xf32>
    %cst_80 = arith.constant 1.250000e+00 : f32
    %249 = vector.broadcast %cst_80 : f32 to vector<8x128xf32>
    %250 = arith.mulf %248, %249 : vector<8x128xf32>
    %251 = arith.mulf %250, %153 : vector<8x128xf32>
    %252 = arith.addf %246, %251 : vector<8x128xf32>
    %cst_81 = arith.constant 6.000000e-01 : f32
    %253 = vector.broadcast %cst_81 : f32 to vector<8x128xf32>
    %254 = arith.subf %0, %253 : vector<8x128xf32>
    %cst_82 = arith.constant 1.250000e+00 : f32
    %255 = vector.broadcast %cst_82 : f32 to vector<8x128xf32>
    %256 = arith.mulf %254, %255 : vector<8x128xf32>
    %257 = arith.mulf %256, %153 : vector<8x128xf32>
    %cst_83 = arith.constant 1.800000e+00 : f32
    %258 = vector.broadcast %cst_83 : f32 to vector<8x128xf32>
    %259 = arith.subf %258, %0 : vector<8x128xf32>
    %cst_84 = arith.constant 1.250000e+00 : f32
    %260 = vector.broadcast %cst_84 : f32 to vector<8x128xf32>
    %261 = arith.mulf %259, %260 : vector<8x128xf32>
    %262 = arith.mulf %261, %164 : vector<8x128xf32>
    %263 = arith.addf %257, %262 : vector<8x128xf32>
    %cst_85 = arith.constant 1.000000e+00 : f32
    %264 = vector.broadcast %cst_85 : f32 to vector<8x128xf32>
    %265 = arith.subf %0, %264 : vector<8x128xf32>
    %cst_86 = arith.constant 1.250000e+00 : f32
    %266 = vector.broadcast %cst_86 : f32 to vector<8x128xf32>
    %267 = arith.mulf %265, %266 : vector<8x128xf32>
    %268 = arith.mulf %267, %164 : vector<8x128xf32>
    %cst_87 = arith.constant 2.200000e+00 : f32
    %269 = vector.broadcast %cst_87 : f32 to vector<8x128xf32>
    %270 = arith.subf %269, %0 : vector<8x128xf32>
    %cst_88 = arith.constant 1.250000e+00 : f32
    %271 = vector.broadcast %cst_88 : f32 to vector<8x128xf32>
    %272 = arith.mulf %270, %271 : vector<8x128xf32>
    %273 = arith.mulf %272, %175 : vector<8x128xf32>
    %274 = arith.addf %268, %273 : vector<8x128xf32>
    %cst_89 = arith.constant -2.200000e+00 : f32
    %275 = vector.broadcast %cst_89 : f32 to vector<8x128xf32>
    %276 = arith.subf %0, %275 : vector<8x128xf32>
    %cst_90 = arith.constant 0.833333313 : f32
    %277 = vector.broadcast %cst_90 : f32 to vector<8x128xf32>
    %278 = arith.mulf %276, %277 : vector<8x128xf32>
    %279 = arith.mulf %278, %186 : vector<8x128xf32>
    %cst_91 = arith.constant -6.000000e-01 : f32
    %280 = vector.broadcast %cst_91 : f32 to vector<8x128xf32>
    %281 = arith.subf %280, %0 : vector<8x128xf32>
    %cst_92 = arith.constant 0.833333313 : f32
    %282 = vector.broadcast %cst_92 : f32 to vector<8x128xf32>
    %283 = arith.mulf %281, %282 : vector<8x128xf32>
    %284 = arith.mulf %283, %197 : vector<8x128xf32>
    %285 = arith.addf %279, %284 : vector<8x128xf32>
    %cst_93 = arith.constant -1.800000e+00 : f32
    %286 = vector.broadcast %cst_93 : f32 to vector<8x128xf32>
    %287 = arith.subf %0, %286 : vector<8x128xf32>
    %cst_94 = arith.constant 0.833333313 : f32
    %288 = vector.broadcast %cst_94 : f32 to vector<8x128xf32>
    %289 = arith.mulf %287, %288 : vector<8x128xf32>
    %290 = arith.mulf %289, %197 : vector<8x128xf32>
    %cst_95 = arith.constant -2.000000e-01 : f32
    %291 = vector.broadcast %cst_95 : f32 to vector<8x128xf32>
    %292 = arith.subf %291, %0 : vector<8x128xf32>
    %cst_96 = arith.constant 0.833333313 : f32
    %293 = vector.broadcast %cst_96 : f32 to vector<8x128xf32>
    %294 = arith.mulf %292, %293 : vector<8x128xf32>
    %295 = arith.mulf %294, %208 : vector<8x128xf32>
    %296 = arith.addf %290, %295 : vector<8x128xf32>
    %cst_97 = arith.constant -1.400000e+00 : f32
    %297 = vector.broadcast %cst_97 : f32 to vector<8x128xf32>
    %298 = arith.subf %0, %297 : vector<8x128xf32>
    %cst_98 = arith.constant 0.833333313 : f32
    %299 = vector.broadcast %cst_98 : f32 to vector<8x128xf32>
    %300 = arith.mulf %298, %299 : vector<8x128xf32>
    %301 = arith.mulf %300, %208 : vector<8x128xf32>
    %cst_99 = arith.constant 2.000000e-01 : f32
    %302 = vector.broadcast %cst_99 : f32 to vector<8x128xf32>
    %303 = arith.subf %302, %0 : vector<8x128xf32>
    %cst_100 = arith.constant 0.833333313 : f32
    %304 = vector.broadcast %cst_100 : f32 to vector<8x128xf32>
    %305 = arith.mulf %303, %304 : vector<8x128xf32>
    %306 = arith.mulf %305, %219 : vector<8x128xf32>
    %307 = arith.addf %301, %306 : vector<8x128xf32>
    %cst_101 = arith.constant -1.000000e+00 : f32
    %308 = vector.broadcast %cst_101 : f32 to vector<8x128xf32>
    %309 = arith.subf %0, %308 : vector<8x128xf32>
    %cst_102 = arith.constant 0.833333313 : f32
    %310 = vector.broadcast %cst_102 : f32 to vector<8x128xf32>
    %311 = arith.mulf %309, %310 : vector<8x128xf32>
    %312 = arith.mulf %311, %219 : vector<8x128xf32>
    %cst_103 = arith.constant 6.000000e-01 : f32
    %313 = vector.broadcast %cst_103 : f32 to vector<8x128xf32>
    %314 = arith.subf %313, %0 : vector<8x128xf32>
    %cst_104 = arith.constant 0.833333313 : f32
    %315 = vector.broadcast %cst_104 : f32 to vector<8x128xf32>
    %316 = arith.mulf %314, %315 : vector<8x128xf32>
    %317 = arith.mulf %316, %230 : vector<8x128xf32>
    %318 = arith.addf %312, %317 : vector<8x128xf32>
    %cst_105 = arith.constant -6.000000e-01 : f32
    %319 = vector.broadcast %cst_105 : f32 to vector<8x128xf32>
    %320 = arith.subf %0, %319 : vector<8x128xf32>
    %cst_106 = arith.constant 0.833333313 : f32
    %321 = vector.broadcast %cst_106 : f32 to vector<8x128xf32>
    %322 = arith.mulf %320, %321 : vector<8x128xf32>
    %323 = arith.mulf %322, %230 : vector<8x128xf32>
    %cst_107 = arith.constant 1.000000e+00 : f32
    %324 = vector.broadcast %cst_107 : f32 to vector<8x128xf32>
    %325 = arith.subf %324, %0 : vector<8x128xf32>
    %cst_108 = arith.constant 0.833333313 : f32
    %326 = vector.broadcast %cst_108 : f32 to vector<8x128xf32>
    %327 = arith.mulf %325, %326 : vector<8x128xf32>
    %328 = arith.mulf %327, %241 : vector<8x128xf32>
    %329 = arith.addf %323, %328 : vector<8x128xf32>
    %cst_109 = arith.constant -2.000000e-01 : f32
    %330 = vector.broadcast %cst_109 : f32 to vector<8x128xf32>
    %331 = arith.subf %0, %330 : vector<8x128xf32>
    %cst_110 = arith.constant 0.833333313 : f32
    %332 = vector.broadcast %cst_110 : f32 to vector<8x128xf32>
    %333 = arith.mulf %331, %332 : vector<8x128xf32>
    %334 = arith.mulf %333, %241 : vector<8x128xf32>
    %cst_111 = arith.constant 1.400000e+00 : f32
    %335 = vector.broadcast %cst_111 : f32 to vector<8x128xf32>
    %336 = arith.subf %335, %0 : vector<8x128xf32>
    %cst_112 = arith.constant 0.833333313 : f32
    %337 = vector.broadcast %cst_112 : f32 to vector<8x128xf32>
    %338 = arith.mulf %336, %337 : vector<8x128xf32>
    %339 = arith.mulf %338, %252 : vector<8x128xf32>
    %340 = arith.addf %334, %339 : vector<8x128xf32>
    %cst_113 = arith.constant 2.000000e-01 : f32
    %341 = vector.broadcast %cst_113 : f32 to vector<8x128xf32>
    %342 = arith.subf %0, %341 : vector<8x128xf32>
    %cst_114 = arith.constant 0.833333313 : f32
    %343 = vector.broadcast %cst_114 : f32 to vector<8x128xf32>
    %344 = arith.mulf %342, %343 : vector<8x128xf32>
    %345 = arith.mulf %344, %252 : vector<8x128xf32>
    %cst_115 = arith.constant 1.800000e+00 : f32
    %346 = vector.broadcast %cst_115 : f32 to vector<8x128xf32>
    %347 = arith.subf %346, %0 : vector<8x128xf32>
    %cst_116 = arith.constant 0.833333313 : f32
    %348 = vector.broadcast %cst_116 : f32 to vector<8x128xf32>
    %349 = arith.mulf %347, %348 : vector<8x128xf32>
    %350 = arith.mulf %349, %263 : vector<8x128xf32>
    %351 = arith.addf %345, %350 : vector<8x128xf32>
    %cst_117 = arith.constant 6.000000e-01 : f32
    %352 = vector.broadcast %cst_117 : f32 to vector<8x128xf32>
    %353 = arith.subf %0, %352 : vector<8x128xf32>
    %cst_118 = arith.constant 0.833333313 : f32
    %354 = vector.broadcast %cst_118 : f32 to vector<8x128xf32>
    %355 = arith.mulf %353, %354 : vector<8x128xf32>
    %356 = arith.mulf %355, %263 : vector<8x128xf32>
    %cst_119 = arith.constant 2.200000e+00 : f32
    %357 = vector.broadcast %cst_119 : f32 to vector<8x128xf32>
    %358 = arith.subf %357, %0 : vector<8x128xf32>
    %cst_120 = arith.constant 0.833333313 : f32
    %359 = vector.broadcast %cst_120 : f32 to vector<8x128xf32>
    %360 = arith.mulf %358, %359 : vector<8x128xf32>
    %361 = arith.mulf %360, %274 : vector<8x128xf32>
    %362 = arith.addf %356, %361 : vector<8x128xf32>
    %363 = arith.truncf %6 : vector<8x128xf32> to vector<8x128xbf16>
    %364 = arith.truncf %285 : vector<8x128xf32> to vector<8x128xbf16>
    %365 = arith.truncf %296 : vector<8x128xf32> to vector<8x128xbf16>
    %366 = arith.truncf %307 : vector<8x128xf32> to vector<8x128xbf16>
    %367 = arith.truncf %318 : vector<8x128xf32> to vector<8x128xbf16>
    %368 = arith.truncf %329 : vector<8x128xf32> to vector<8x128xbf16>
    %369 = arith.truncf %340 : vector<8x128xf32> to vector<8x128xbf16>
    %370 = arith.truncf %351 : vector<8x128xf32> to vector<8x128xbf16>
    %371 = arith.truncf %362 : vector<8x128xf32> to vector<8x128xbf16>
    %372 = tpu.concatenate %363, %364, %365, %366, %367, %368, %369, %370, %371 in 1 : vector<8x128xbf16>, vector<8x128xbf16>, vector<8x128xbf16>, vector<8x128xbf16>, vector<8x128xbf16>, vector<8x128xbf16>, vector<8x128xbf16>, vector<8x128xbf16>, vector<8x128xbf16> -> vector<8x1152xbf16>
    %c0_121 = arith.constant 0 : index
    %c0_122 = arith.constant 0 : index
    %373 = vector.load %arg2[%c0_121, %c0_122] : memref<1152x128xbf16, #tpu.memory_space<vmem>>, vector<1152x128xbf16>
    %cst_123 = arith.constant dense<0.000000e+00> : vector<8x128xf32>
    %374 = tpu.matmul %372, %373, %cst_123 {dimension_numbers = #tpu.dot_dimension_numbers<[1], [0], [0], [1], [0, 0, 1, 1], [], []>} : vector<8x1152xbf16>, vector<1152x128xbf16>, vector<8x128xf32> -> vector<8x128xf32>
    %375 = arith.negf %374 : vector<8x128xf32>
    %376 = math.exp %375 : vector<8x128xf32>
    %cst_124 = arith.constant 1.000000e+00 : f32
    %377 = vector.broadcast %cst_124 : f32 to vector<8x128xf32>
    %378 = arith.addf %377, %376 : vector<8x128xf32>
    %379 = arith.divf %377, %378 : vector<8x128xf32>
    %380 = arith.mulf %374, %379 : vector<8x128xf32>
    %cst_125 = arith.constant -2.200000e+00 : f32
    %381 = vector.broadcast %cst_125 : f32 to vector<8x128xf32>
    %382 = arith.cmpf oge, %374, %381 : vector<8x128xf32>
    %383 = arith.extui %382 : vector<8x128xi1> to vector<8x128xi32>
    %384 = arith.sitofp %383 : vector<8x128xi32> to vector<8x128xf32>
    %cst_126 = arith.constant -1.800000e+00 : f32
    %385 = vector.broadcast %cst_126 : f32 to vector<8x128xf32>
    %386 = arith.cmpf oge, %374, %385 : vector<8x128xf32>
    %387 = arith.extui %386 : vector<8x128xi1> to vector<8x128xi32>
    %388 = arith.sitofp %387 : vector<8x128xi32> to vector<8x128xf32>
    %cst_127 = arith.constant -1.400000e+00 : f32
    %389 = vector.broadcast %cst_127 : f32 to vector<8x128xf32>
    %390 = arith.cmpf oge, %374, %389 : vector<8x128xf32>
    %391 = arith.extui %390 : vector<8x128xi1> to vector<8x128xi32>
    %392 = arith.sitofp %391 : vector<8x128xi32> to vector<8x128xf32>
    %cst_128 = arith.constant -1.000000e+00 : f32
    %393 = vector.broadcast %cst_128 : f32 to vector<8x128xf32>
    %394 = arith.cmpf oge, %374, %393 : vector<8x128xf32>
    %395 = arith.extui %394 : vector<8x128xi1> to vector<8x128xi32>
    %396 = arith.sitofp %395 : vector<8x128xi32> to vector<8x128xf32>
    %cst_129 = arith.constant -6.000000e-01 : f32
    %397 = vector.broadcast %cst_129 : f32 to vector<8x128xf32>
    %398 = arith.cmpf oge, %374, %397 : vector<8x128xf32>
    %399 = arith.extui %398 : vector<8x128xi1> to vector<8x128xi32>
    %400 = arith.sitofp %399 : vector<8x128xi32> to vector<8x128xf32>
    %cst_130 = arith.constant -2.000000e-01 : f32
    %401 = vector.broadcast %cst_130 : f32 to vector<8x128xf32>
    %402 = arith.cmpf oge, %374, %401 : vector<8x128xf32>
    %403 = arith.extui %402 : vector<8x128xi1> to vector<8x128xi32>
    %404 = arith.sitofp %403 : vector<8x128xi32> to vector<8x128xf32>
    %cst_131 = arith.constant 2.000000e-01 : f32
    %405 = vector.broadcast %cst_131 : f32 to vector<8x128xf32>
    %406 = arith.cmpf oge, %374, %405 : vector<8x128xf32>
    %407 = arith.extui %406 : vector<8x128xi1> to vector<8x128xi32>
    %408 = arith.sitofp %407 : vector<8x128xi32> to vector<8x128xf32>
    %cst_132 = arith.constant 6.000000e-01 : f32
    %409 = vector.broadcast %cst_132 : f32 to vector<8x128xf32>
    %410 = arith.cmpf oge, %374, %409 : vector<8x128xf32>
    %411 = arith.extui %410 : vector<8x128xi1> to vector<8x128xi32>
    %412 = arith.sitofp %411 : vector<8x128xi32> to vector<8x128xf32>
    %cst_133 = arith.constant 1.000000e+00 : f32
    %413 = vector.broadcast %cst_133 : f32 to vector<8x128xf32>
    %414 = arith.cmpf oge, %374, %413 : vector<8x128xf32>
    %415 = arith.extui %414 : vector<8x128xi1> to vector<8x128xi32>
    %416 = arith.sitofp %415 : vector<8x128xi32> to vector<8x128xf32>
    %cst_134 = arith.constant 1.400000e+00 : f32
    %417 = vector.broadcast %cst_134 : f32 to vector<8x128xf32>
    %418 = arith.cmpf oge, %374, %417 : vector<8x128xf32>
    %419 = arith.extui %418 : vector<8x128xi1> to vector<8x128xi32>
    %420 = arith.sitofp %419 : vector<8x128xi32> to vector<8x128xf32>
    %cst_135 = arith.constant 1.800000e+00 : f32
    %421 = vector.broadcast %cst_135 : f32 to vector<8x128xf32>
    %422 = arith.cmpf oge, %374, %421 : vector<8x128xf32>
    %423 = arith.extui %422 : vector<8x128xi1> to vector<8x128xi32>
    %424 = arith.sitofp %423 : vector<8x128xi32> to vector<8x128xf32>
    %cst_136 = arith.constant 2.200000e+00 : f32
    %425 = vector.broadcast %cst_136 : f32 to vector<8x128xf32>
    %426 = arith.cmpf oge, %374, %425 : vector<8x128xf32>
    %427 = arith.extui %426 : vector<8x128xi1> to vector<8x128xi32>
    %428 = arith.sitofp %427 : vector<8x128xi32> to vector<8x128xf32>
    %429 = arith.subf %384, %388 : vector<8x128xf32>
    %430 = arith.subf %388, %392 : vector<8x128xf32>
    %431 = arith.subf %392, %396 : vector<8x128xf32>
    %432 = arith.subf %396, %400 : vector<8x128xf32>
    %433 = arith.subf %400, %404 : vector<8x128xf32>
    %434 = arith.subf %404, %408 : vector<8x128xf32>
    %435 = arith.subf %408, %412 : vector<8x128xf32>
    %436 = arith.subf %412, %416 : vector<8x128xf32>
    %437 = arith.subf %416, %420 : vector<8x128xf32>
    %438 = arith.subf %420, %424 : vector<8x128xf32>
    %439 = arith.subf %424, %428 : vector<8x128xf32>
    %cst_137 = arith.constant -2.200000e+00 : f32
    %440 = vector.broadcast %cst_137 : f32 to vector<8x128xf32>
    %441 = arith.subf %374, %440 : vector<8x128xf32>
    %cst_138 = arith.constant 2.500000e+00 : f32
    %442 = vector.broadcast %cst_138 : f32 to vector<8x128xf32>
    %443 = arith.mulf %441, %442 : vector<8x128xf32>
    %444 = arith.mulf %443, %429 : vector<8x128xf32>
    %cst_139 = arith.constant -1.400000e+00 : f32
    %445 = vector.broadcast %cst_139 : f32 to vector<8x128xf32>
    %446 = arith.subf %445, %374 : vector<8x128xf32>
    %cst_140 = arith.constant 2.500000e+00 : f32
    %447 = vector.broadcast %cst_140 : f32 to vector<8x128xf32>
    %448 = arith.mulf %446, %447 : vector<8x128xf32>
    %449 = arith.mulf %448, %430 : vector<8x128xf32>
    %450 = arith.addf %444, %449 : vector<8x128xf32>
    %cst_141 = arith.constant -1.800000e+00 : f32
    %451 = vector.broadcast %cst_141 : f32 to vector<8x128xf32>
    %452 = arith.subf %374, %451 : vector<8x128xf32>
    %cst_142 = arith.constant 2.500000e+00 : f32
    %453 = vector.broadcast %cst_142 : f32 to vector<8x128xf32>
    %454 = arith.mulf %452, %453 : vector<8x128xf32>
    %455 = arith.mulf %454, %430 : vector<8x128xf32>
    %cst_143 = arith.constant -1.000000e+00 : f32
    %456 = vector.broadcast %cst_143 : f32 to vector<8x128xf32>
    %457 = arith.subf %456, %374 : vector<8x128xf32>
    %cst_144 = arith.constant 2.500000e+00 : f32
    %458 = vector.broadcast %cst_144 : f32 to vector<8x128xf32>
    %459 = arith.mulf %457, %458 : vector<8x128xf32>
    %460 = arith.mulf %459, %431 : vector<8x128xf32>
    %461 = arith.addf %455, %460 : vector<8x128xf32>
    %cst_145 = arith.constant -1.400000e+00 : f32
    %462 = vector.broadcast %cst_145 : f32 to vector<8x128xf32>
    %463 = arith.subf %374, %462 : vector<8x128xf32>
    %cst_146 = arith.constant 2.500000e+00 : f32
    %464 = vector.broadcast %cst_146 : f32 to vector<8x128xf32>
    %465 = arith.mulf %463, %464 : vector<8x128xf32>
    %466 = arith.mulf %465, %431 : vector<8x128xf32>
    %cst_147 = arith.constant -6.000000e-01 : f32
    %467 = vector.broadcast %cst_147 : f32 to vector<8x128xf32>
    %468 = arith.subf %467, %374 : vector<8x128xf32>
    %cst_148 = arith.constant 2.500000e+00 : f32
    %469 = vector.broadcast %cst_148 : f32 to vector<8x128xf32>
    %470 = arith.mulf %468, %469 : vector<8x128xf32>
    %471 = arith.mulf %470, %432 : vector<8x128xf32>
    %472 = arith.addf %466, %471 : vector<8x128xf32>
    %cst_149 = arith.constant -1.000000e+00 : f32
    %473 = vector.broadcast %cst_149 : f32 to vector<8x128xf32>
    %474 = arith.subf %374, %473 : vector<8x128xf32>
    %cst_150 = arith.constant 2.500000e+00 : f32
    %475 = vector.broadcast %cst_150 : f32 to vector<8x128xf32>
    %476 = arith.mulf %474, %475 : vector<8x128xf32>
    %477 = arith.mulf %476, %432 : vector<8x128xf32>
    %cst_151 = arith.constant -2.000000e-01 : f32
    %478 = vector.broadcast %cst_151 : f32 to vector<8x128xf32>
    %479 = arith.subf %478, %374 : vector<8x128xf32>
    %cst_152 = arith.constant 2.500000e+00 : f32
    %480 = vector.broadcast %cst_152 : f32 to vector<8x128xf32>
    %481 = arith.mulf %479, %480 : vector<8x128xf32>
    %482 = arith.mulf %481, %433 : vector<8x128xf32>
    %483 = arith.addf %477, %482 : vector<8x128xf32>
    %cst_153 = arith.constant -6.000000e-01 : f32
    %484 = vector.broadcast %cst_153 : f32 to vector<8x128xf32>
    %485 = arith.subf %374, %484 : vector<8x128xf32>
    %cst_154 = arith.constant 2.500000e+00 : f32
    %486 = vector.broadcast %cst_154 : f32 to vector<8x128xf32>
    %487 = arith.mulf %485, %486 : vector<8x128xf32>
    %488 = arith.mulf %487, %433 : vector<8x128xf32>
    %cst_155 = arith.constant 2.000000e-01 : f32
    %489 = vector.broadcast %cst_155 : f32 to vector<8x128xf32>
    %490 = arith.subf %489, %374 : vector<8x128xf32>
    %cst_156 = arith.constant 2.500000e+00 : f32
    %491 = vector.broadcast %cst_156 : f32 to vector<8x128xf32>
    %492 = arith.mulf %490, %491 : vector<8x128xf32>
    %493 = arith.mulf %492, %434 : vector<8x128xf32>
    %494 = arith.addf %488, %493 : vector<8x128xf32>
    %cst_157 = arith.constant -2.000000e-01 : f32
    %495 = vector.broadcast %cst_157 : f32 to vector<8x128xf32>
    %496 = arith.subf %374, %495 : vector<8x128xf32>
    %cst_158 = arith.constant 2.500000e+00 : f32
    %497 = vector.broadcast %cst_158 : f32 to vector<8x128xf32>
    %498 = arith.mulf %496, %497 : vector<8x128xf32>
    %499 = arith.mulf %498, %434 : vector<8x128xf32>
    %cst_159 = arith.constant 6.000000e-01 : f32
    %500 = vector.broadcast %cst_159 : f32 to vector<8x128xf32>
    %501 = arith.subf %500, %374 : vector<8x128xf32>
    %cst_160 = arith.constant 2.500000e+00 : f32
    %502 = vector.broadcast %cst_160 : f32 to vector<8x128xf32>
    %503 = arith.mulf %501, %502 : vector<8x128xf32>
    %504 = arith.mulf %503, %435 : vector<8x128xf32>
    %505 = arith.addf %499, %504 : vector<8x128xf32>
    %cst_161 = arith.constant 2.000000e-01 : f32
    %506 = vector.broadcast %cst_161 : f32 to vector<8x128xf32>
    %507 = arith.subf %374, %506 : vector<8x128xf32>
    %cst_162 = arith.constant 2.500000e+00 : f32
    %508 = vector.broadcast %cst_162 : f32 to vector<8x128xf32>
    %509 = arith.mulf %507, %508 : vector<8x128xf32>
    %510 = arith.mulf %509, %435 : vector<8x128xf32>
    %cst_163 = arith.constant 1.000000e+00 : f32
    %511 = vector.broadcast %cst_163 : f32 to vector<8x128xf32>
    %512 = arith.subf %511, %374 : vector<8x128xf32>
    %cst_164 = arith.constant 2.500000e+00 : f32
    %513 = vector.broadcast %cst_164 : f32 to vector<8x128xf32>
    %514 = arith.mulf %512, %513 : vector<8x128xf32>
    %515 = arith.mulf %514, %436 : vector<8x128xf32>
    %516 = arith.addf %510, %515 : vector<8x128xf32>
    %cst_165 = arith.constant 6.000000e-01 : f32
    %517 = vector.broadcast %cst_165 : f32 to vector<8x128xf32>
    %518 = arith.subf %374, %517 : vector<8x128xf32>
    %cst_166 = arith.constant 2.500000e+00 : f32
    %519 = vector.broadcast %cst_166 : f32 to vector<8x128xf32>
    %520 = arith.mulf %518, %519 : vector<8x128xf32>
    %521 = arith.mulf %520, %436 : vector<8x128xf32>
    %cst_167 = arith.constant 1.400000e+00 : f32
    %522 = vector.broadcast %cst_167 : f32 to vector<8x128xf32>
    %523 = arith.subf %522, %374 : vector<8x128xf32>
    %cst_168 = arith.constant 2.500000e+00 : f32
    %524 = vector.broadcast %cst_168 : f32 to vector<8x128xf32>
    %525 = arith.mulf %523, %524 : vector<8x128xf32>
    %526 = arith.mulf %525, %437 : vector<8x128xf32>
    %527 = arith.addf %521, %526 : vector<8x128xf32>
    %cst_169 = arith.constant 1.000000e+00 : f32
    %528 = vector.broadcast %cst_169 : f32 to vector<8x128xf32>
    %529 = arith.subf %374, %528 : vector<8x128xf32>
    %cst_170 = arith.constant 2.500000e+00 : f32
    %530 = vector.broadcast %cst_170 : f32 to vector<8x128xf32>
    %531 = arith.mulf %529, %530 : vector<8x128xf32>
    %532 = arith.mulf %531, %437 : vector<8x128xf32>
    %cst_171 = arith.constant 1.800000e+00 : f32
    %533 = vector.broadcast %cst_171 : f32 to vector<8x128xf32>
    %534 = arith.subf %533, %374 : vector<8x128xf32>
    %cst_172 = arith.constant 2.500000e+00 : f32
    %535 = vector.broadcast %cst_172 : f32 to vector<8x128xf32>
    %536 = arith.mulf %534, %535 : vector<8x128xf32>
    %537 = arith.mulf %536, %438 : vector<8x128xf32>
    %538 = arith.addf %532, %537 : vector<8x128xf32>
    %cst_173 = arith.constant 1.400000e+00 : f32
    %539 = vector.broadcast %cst_173 : f32 to vector<8x128xf32>
    %540 = arith.subf %374, %539 : vector<8x128xf32>
    %cst_174 = arith.constant 2.500000e+00 : f32
    %541 = vector.broadcast %cst_174 : f32 to vector<8x128xf32>
    %542 = arith.mulf %540, %541 : vector<8x128xf32>
    %543 = arith.mulf %542, %438 : vector<8x128xf32>
    %cst_175 = arith.constant 2.200000e+00 : f32
    %544 = vector.broadcast %cst_175 : f32 to vector<8x128xf32>
    %545 = arith.subf %544, %374 : vector<8x128xf32>
    %cst_176 = arith.constant 2.500000e+00 : f32
    %546 = vector.broadcast %cst_176 : f32 to vector<8x128xf32>
    %547 = arith.mulf %545, %546 : vector<8x128xf32>
    %548 = arith.mulf %547, %439 : vector<8x128xf32>
    %549 = arith.addf %543, %548 : vector<8x128xf32>
    %cst_177 = arith.constant -2.200000e+00 : f32
    %550 = vector.broadcast %cst_177 : f32 to vector<8x128xf32>
    %551 = arith.subf %374, %550 : vector<8x128xf32>
    %cst_178 = arith.constant 1.250000e+00 : f32
    %552 = vector.broadcast %cst_178 : f32 to vector<8x128xf32>
    %553 = arith.mulf %551, %552 : vector<8x128xf32>
    %554 = arith.mulf %553, %450 : vector<8x128xf32>
    %cst_179 = arith.constant -1.000000e+00 : f32
    %555 = vector.broadcast %cst_179 : f32 to vector<8x128xf32>
    %556 = arith.subf %555, %374 : vector<8x128xf32>
    %cst_180 = arith.constant 1.250000e+00 : f32
    %557 = vector.broadcast %cst_180 : f32 to vector<8x128xf32>
    %558 = arith.mulf %556, %557 : vector<8x128xf32>
    %559 = arith.mulf %558, %461 : vector<8x128xf32>
    %560 = arith.addf %554, %559 : vector<8x128xf32>
    %cst_181 = arith.constant -1.800000e+00 : f32
    %561 = vector.broadcast %cst_181 : f32 to vector<8x128xf32>
    %562 = arith.subf %374, %561 : vector<8x128xf32>
    %cst_182 = arith.constant 1.250000e+00 : f32
    %563 = vector.broadcast %cst_182 : f32 to vector<8x128xf32>
    %564 = arith.mulf %562, %563 : vector<8x128xf32>
    %565 = arith.mulf %564, %461 : vector<8x128xf32>
    %cst_183 = arith.constant -6.000000e-01 : f32
    %566 = vector.broadcast %cst_183 : f32 to vector<8x128xf32>
    %567 = arith.subf %566, %374 : vector<8x128xf32>
    %cst_184 = arith.constant 1.250000e+00 : f32
    %568 = vector.broadcast %cst_184 : f32 to vector<8x128xf32>
    %569 = arith.mulf %567, %568 : vector<8x128xf32>
    %570 = arith.mulf %569, %472 : vector<8x128xf32>
    %571 = arith.addf %565, %570 : vector<8x128xf32>
    %cst_185 = arith.constant -1.400000e+00 : f32
    %572 = vector.broadcast %cst_185 : f32 to vector<8x128xf32>
    %573 = arith.subf %374, %572 : vector<8x128xf32>
    %cst_186 = arith.constant 1.250000e+00 : f32
    %574 = vector.broadcast %cst_186 : f32 to vector<8x128xf32>
    %575 = arith.mulf %573, %574 : vector<8x128xf32>
    %576 = arith.mulf %575, %472 : vector<8x128xf32>
    %cst_187 = arith.constant -2.000000e-01 : f32
    %577 = vector.broadcast %cst_187 : f32 to vector<8x128xf32>
    %578 = arith.subf %577, %374 : vector<8x128xf32>
    %cst_188 = arith.constant 1.250000e+00 : f32
    %579 = vector.broadcast %cst_188 : f32 to vector<8x128xf32>
    %580 = arith.mulf %578, %579 : vector<8x128xf32>
    %581 = arith.mulf %580, %483 : vector<8x128xf32>
    %582 = arith.addf %576, %581 : vector<8x128xf32>
    %cst_189 = arith.constant -1.000000e+00 : f32
    %583 = vector.broadcast %cst_189 : f32 to vector<8x128xf32>
    %584 = arith.subf %374, %583 : vector<8x128xf32>
    %cst_190 = arith.constant 1.250000e+00 : f32
    %585 = vector.broadcast %cst_190 : f32 to vector<8x128xf32>
    %586 = arith.mulf %584, %585 : vector<8x128xf32>
    %587 = arith.mulf %586, %483 : vector<8x128xf32>
    %cst_191 = arith.constant 2.000000e-01 : f32
    %588 = vector.broadcast %cst_191 : f32 to vector<8x128xf32>
    %589 = arith.subf %588, %374 : vector<8x128xf32>
    %cst_192 = arith.constant 1.250000e+00 : f32
    %590 = vector.broadcast %cst_192 : f32 to vector<8x128xf32>
    %591 = arith.mulf %589, %590 : vector<8x128xf32>
    %592 = arith.mulf %591, %494 : vector<8x128xf32>
    %593 = arith.addf %587, %592 : vector<8x128xf32>
    %cst_193 = arith.constant -6.000000e-01 : f32
    %594 = vector.broadcast %cst_193 : f32 to vector<8x128xf32>
    %595 = arith.subf %374, %594 : vector<8x128xf32>
    %cst_194 = arith.constant 1.250000e+00 : f32
    %596 = vector.broadcast %cst_194 : f32 to vector<8x128xf32>
    %597 = arith.mulf %595, %596 : vector<8x128xf32>
    %598 = arith.mulf %597, %494 : vector<8x128xf32>
    %cst_195 = arith.constant 6.000000e-01 : f32
    %599 = vector.broadcast %cst_195 : f32 to vector<8x128xf32>
    %600 = arith.subf %599, %374 : vector<8x128xf32>
    %cst_196 = arith.constant 1.250000e+00 : f32
    %601 = vector.broadcast %cst_196 : f32 to vector<8x128xf32>
    %602 = arith.mulf %600, %601 : vector<8x128xf32>
    %603 = arith.mulf %602, %505 : vector<8x128xf32>
    %604 = arith.addf %598, %603 : vector<8x128xf32>
    %cst_197 = arith.constant -2.000000e-01 : f32
    %605 = vector.broadcast %cst_197 : f32 to vector<8x128xf32>
    %606 = arith.subf %374, %605 : vector<8x128xf32>
    %cst_198 = arith.constant 1.250000e+00 : f32
    %607 = vector.broadcast %cst_198 : f32 to vector<8x128xf32>
    %608 = arith.mulf %606, %607 : vector<8x128xf32>
    %609 = arith.mulf %608, %505 : vector<8x128xf32>
    %cst_199 = arith.constant 1.000000e+00 : f32
    %610 = vector.broadcast %cst_199 : f32 to vector<8x128xf32>
    %611 = arith.subf %610, %374 : vector<8x128xf32>
    %cst_200 = arith.constant 1.250000e+00 : f32
    %612 = vector.broadcast %cst_200 : f32 to vector<8x128xf32>
    %613 = arith.mulf %611, %612 : vector<8x128xf32>
    %614 = arith.mulf %613, %516 : vector<8x128xf32>
    %615 = arith.addf %609, %614 : vector<8x128xf32>
    %cst_201 = arith.constant 2.000000e-01 : f32
    %616 = vector.broadcast %cst_201 : f32 to vector<8x128xf32>
    %617 = arith.subf %374, %616 : vector<8x128xf32>
    %cst_202 = arith.constant 1.250000e+00 : f32
    %618 = vector.broadcast %cst_202 : f32 to vector<8x128xf32>
    %619 = arith.mulf %617, %618 : vector<8x128xf32>
    %620 = arith.mulf %619, %516 : vector<8x128xf32>
    %cst_203 = arith.constant 1.400000e+00 : f32
    %621 = vector.broadcast %cst_203 : f32 to vector<8x128xf32>
    %622 = arith.subf %621, %374 : vector<8x128xf32>
    %cst_204 = arith.constant 1.250000e+00 : f32
    %623 = vector.broadcast %cst_204 : f32 to vector<8x128xf32>
    %624 = arith.mulf %622, %623 : vector<8x128xf32>
    %625 = arith.mulf %624, %527 : vector<8x128xf32>
    %626 = arith.addf %620, %625 : vector<8x128xf32>
    %cst_205 = arith.constant 6.000000e-01 : f32
    %627 = vector.broadcast %cst_205 : f32 to vector<8x128xf32>
    %628 = arith.subf %374, %627 : vector<8x128xf32>
    %cst_206 = arith.constant 1.250000e+00 : f32
    %629 = vector.broadcast %cst_206 : f32 to vector<8x128xf32>
    %630 = arith.mulf %628, %629 : vector<8x128xf32>
    %631 = arith.mulf %630, %527 : vector<8x128xf32>
    %cst_207 = arith.constant 1.800000e+00 : f32
    %632 = vector.broadcast %cst_207 : f32 to vector<8x128xf32>
    %633 = arith.subf %632, %374 : vector<8x128xf32>
    %cst_208 = arith.constant 1.250000e+00 : f32
    %634 = vector.broadcast %cst_208 : f32 to vector<8x128xf32>
    %635 = arith.mulf %633, %634 : vector<8x128xf32>
    %636 = arith.mulf %635, %538 : vector<8x128xf32>
    %637 = arith.addf %631, %636 : vector<8x128xf32>
    %cst_209 = arith.constant 1.000000e+00 : f32
    %638 = vector.broadcast %cst_209 : f32 to vector<8x128xf32>
    %639 = arith.subf %374, %638 : vector<8x128xf32>
    %cst_210 = arith.constant 1.250000e+00 : f32
    %640 = vector.broadcast %cst_210 : f32 to vector<8x128xf32>
    %641 = arith.mulf %639, %640 : vector<8x128xf32>
    %642 = arith.mulf %641, %538 : vector<8x128xf32>
    %cst_211 = arith.constant 2.200000e+00 : f32
    %643 = vector.broadcast %cst_211 : f32 to vector<8x128xf32>
    %644 = arith.subf %643, %374 : vector<8x128xf32>
    %cst_212 = arith.constant 1.250000e+00 : f32
    %645 = vector.broadcast %cst_212 : f32 to vector<8x128xf32>
    %646 = arith.mulf %644, %645 : vector<8x128xf32>
    %647 = arith.mulf %646, %549 : vector<8x128xf32>
    %648 = arith.addf %642, %647 : vector<8x128xf32>
    %cst_213 = arith.constant -2.200000e+00 : f32
    %649 = vector.broadcast %cst_213 : f32 to vector<8x128xf32>
    %650 = arith.subf %374, %649 : vector<8x128xf32>
    %cst_214 = arith.constant 0.833333313 : f32
    %651 = vector.broadcast %cst_214 : f32 to vector<8x128xf32>
    %652 = arith.mulf %650, %651 : vector<8x128xf32>
    %653 = arith.mulf %652, %560 : vector<8x128xf32>
    %cst_215 = arith.constant -6.000000e-01 : f32
    %654 = vector.broadcast %cst_215 : f32 to vector<8x128xf32>
    %655 = arith.subf %654, %374 : vector<8x128xf32>
    %cst_216 = arith.constant 0.833333313 : f32
    %656 = vector.broadcast %cst_216 : f32 to vector<8x128xf32>
    %657 = arith.mulf %655, %656 : vector<8x128xf32>
    %658 = arith.mulf %657, %571 : vector<8x128xf32>
    %659 = arith.addf %653, %658 : vector<8x128xf32>
    %cst_217 = arith.constant -1.800000e+00 : f32
    %660 = vector.broadcast %cst_217 : f32 to vector<8x128xf32>
    %661 = arith.subf %374, %660 : vector<8x128xf32>
    %cst_218 = arith.constant 0.833333313 : f32
    %662 = vector.broadcast %cst_218 : f32 to vector<8x128xf32>
    %663 = arith.mulf %661, %662 : vector<8x128xf32>
    %664 = arith.mulf %663, %571 : vector<8x128xf32>
    %cst_219 = arith.constant -2.000000e-01 : f32
    %665 = vector.broadcast %cst_219 : f32 to vector<8x128xf32>
    %666 = arith.subf %665, %374 : vector<8x128xf32>
    %cst_220 = arith.constant 0.833333313 : f32
    %667 = vector.broadcast %cst_220 : f32 to vector<8x128xf32>
    %668 = arith.mulf %666, %667 : vector<8x128xf32>
    %669 = arith.mulf %668, %582 : vector<8x128xf32>
    %670 = arith.addf %664, %669 : vector<8x128xf32>
    %cst_221 = arith.constant -1.400000e+00 : f32
    %671 = vector.broadcast %cst_221 : f32 to vector<8x128xf32>
    %672 = arith.subf %374, %671 : vector<8x128xf32>
    %cst_222 = arith.constant 0.833333313 : f32
    %673 = vector.broadcast %cst_222 : f32 to vector<8x128xf32>
    %674 = arith.mulf %672, %673 : vector<8x128xf32>
    %675 = arith.mulf %674, %582 : vector<8x128xf32>
    %cst_223 = arith.constant 2.000000e-01 : f32
    %676 = vector.broadcast %cst_223 : f32 to vector<8x128xf32>
    %677 = arith.subf %676, %374 : vector<8x128xf32>
    %cst_224 = arith.constant 0.833333313 : f32
    %678 = vector.broadcast %cst_224 : f32 to vector<8x128xf32>
    %679 = arith.mulf %677, %678 : vector<8x128xf32>
    %680 = arith.mulf %679, %593 : vector<8x128xf32>
    %681 = arith.addf %675, %680 : vector<8x128xf32>
    %cst_225 = arith.constant -1.000000e+00 : f32
    %682 = vector.broadcast %cst_225 : f32 to vector<8x128xf32>
    %683 = arith.subf %374, %682 : vector<8x128xf32>
    %cst_226 = arith.constant 0.833333313 : f32
    %684 = vector.broadcast %cst_226 : f32 to vector<8x128xf32>
    %685 = arith.mulf %683, %684 : vector<8x128xf32>
    %686 = arith.mulf %685, %593 : vector<8x128xf32>
    %cst_227 = arith.constant 6.000000e-01 : f32
    %687 = vector.broadcast %cst_227 : f32 to vector<8x128xf32>
    %688 = arith.subf %687, %374 : vector<8x128xf32>
    %cst_228 = arith.constant 0.833333313 : f32
    %689 = vector.broadcast %cst_228 : f32 to vector<8x128xf32>
    %690 = arith.mulf %688, %689 : vector<8x128xf32>
    %691 = arith.mulf %690, %604 : vector<8x128xf32>
    %692 = arith.addf %686, %691 : vector<8x128xf32>
    %cst_229 = arith.constant -6.000000e-01 : f32
    %693 = vector.broadcast %cst_229 : f32 to vector<8x128xf32>
    %694 = arith.subf %374, %693 : vector<8x128xf32>
    %cst_230 = arith.constant 0.833333313 : f32
    %695 = vector.broadcast %cst_230 : f32 to vector<8x128xf32>
    %696 = arith.mulf %694, %695 : vector<8x128xf32>
    %697 = arith.mulf %696, %604 : vector<8x128xf32>
    %cst_231 = arith.constant 1.000000e+00 : f32
    %698 = vector.broadcast %cst_231 : f32 to vector<8x128xf32>
    %699 = arith.subf %698, %374 : vector<8x128xf32>
    %cst_232 = arith.constant 0.833333313 : f32
    %700 = vector.broadcast %cst_232 : f32 to vector<8x128xf32>
    %701 = arith.mulf %699, %700 : vector<8x128xf32>
    %702 = arith.mulf %701, %615 : vector<8x128xf32>
    %703 = arith.addf %697, %702 : vector<8x128xf32>
    %cst_233 = arith.constant -2.000000e-01 : f32
    %704 = vector.broadcast %cst_233 : f32 to vector<8x128xf32>
    %705 = arith.subf %374, %704 : vector<8x128xf32>
    %cst_234 = arith.constant 0.833333313 : f32
    %706 = vector.broadcast %cst_234 : f32 to vector<8x128xf32>
    %707 = arith.mulf %705, %706 : vector<8x128xf32>
    %708 = arith.mulf %707, %615 : vector<8x128xf32>
    %cst_235 = arith.constant 1.400000e+00 : f32
    %709 = vector.broadcast %cst_235 : f32 to vector<8x128xf32>
    %710 = arith.subf %709, %374 : vector<8x128xf32>
    %cst_236 = arith.constant 0.833333313 : f32
    %711 = vector.broadcast %cst_236 : f32 to vector<8x128xf32>
    %712 = arith.mulf %710, %711 : vector<8x128xf32>
    %713 = arith.mulf %712, %626 : vector<8x128xf32>
    %714 = arith.addf %708, %713 : vector<8x128xf32>
    %cst_237 = arith.constant 2.000000e-01 : f32
    %715 = vector.broadcast %cst_237 : f32 to vector<8x128xf32>
    %716 = arith.subf %374, %715 : vector<8x128xf32>
    %cst_238 = arith.constant 0.833333313 : f32
    %717 = vector.broadcast %cst_238 : f32 to vector<8x128xf32>
    %718 = arith.mulf %716, %717 : vector<8x128xf32>
    %719 = arith.mulf %718, %626 : vector<8x128xf32>
    %cst_239 = arith.constant 1.800000e+00 : f32
    %720 = vector.broadcast %cst_239 : f32 to vector<8x128xf32>
    %721 = arith.subf %720, %374 : vector<8x128xf32>
    %cst_240 = arith.constant 0.833333313 : f32
    %722 = vector.broadcast %cst_240 : f32 to vector<8x128xf32>
    %723 = arith.mulf %721, %722 : vector<8x128xf32>
    %724 = arith.mulf %723, %637 : vector<8x128xf32>
    %725 = arith.addf %719, %724 : vector<8x128xf32>
    %cst_241 = arith.constant 6.000000e-01 : f32
    %726 = vector.broadcast %cst_241 : f32 to vector<8x128xf32>
    %727 = arith.subf %374, %726 : vector<8x128xf32>
    %cst_242 = arith.constant 0.833333313 : f32
    %728 = vector.broadcast %cst_242 : f32 to vector<8x128xf32>
    %729 = arith.mulf %727, %728 : vector<8x128xf32>
    %730 = arith.mulf %729, %637 : vector<8x128xf32>
    %cst_243 = arith.constant 2.200000e+00 : f32
    %731 = vector.broadcast %cst_243 : f32 to vector<8x128xf32>
    %732 = arith.subf %731, %374 : vector<8x128xf32>
    %cst_244 = arith.constant 0.833333313 : f32
    %733 = vector.broadcast %cst_244 : f32 to vector<8x128xf32>
    %734 = arith.mulf %732, %733 : vector<8x128xf32>
    %735 = arith.mulf %734, %648 : vector<8x128xf32>
    %736 = arith.addf %730, %735 : vector<8x128xf32>
    %737 = arith.truncf %380 : vector<8x128xf32> to vector<8x128xbf16>
    %738 = arith.truncf %659 : vector<8x128xf32> to vector<8x128xbf16>
    %739 = arith.truncf %670 : vector<8x128xf32> to vector<8x128xbf16>
    %740 = arith.truncf %681 : vector<8x128xf32> to vector<8x128xbf16>
    %741 = arith.truncf %692 : vector<8x128xf32> to vector<8x128xbf16>
    %742 = arith.truncf %703 : vector<8x128xf32> to vector<8x128xbf16>
    %743 = arith.truncf %714 : vector<8x128xf32> to vector<8x128xbf16>
    %744 = arith.truncf %725 : vector<8x128xf32> to vector<8x128xbf16>
    %745 = arith.truncf %736 : vector<8x128xf32> to vector<8x128xbf16>
    %746 = tpu.concatenate %737, %738, %739, %740, %741, %742, %743, %744, %745 in 1 : vector<8x128xbf16>, vector<8x128xbf16>, vector<8x128xbf16>, vector<8x128xbf16>, vector<8x128xbf16>, vector<8x128xbf16>, vector<8x128xbf16>, vector<8x128xbf16>, vector<8x128xbf16> -> vector<8x1152xbf16>
    %c0_245 = arith.constant 0 : index
    %c0_246 = arith.constant 0 : index
    %747 = vector.load %arg3[%c0_245, %c0_246] : memref<1152x128xbf16, #tpu.memory_space<vmem>>, vector<1152x128xbf16>
    %cst_247 = arith.constant dense<0.000000e+00> : vector<8x128xf32>
    %748 = tpu.matmul %746, %747, %cst_247 {dimension_numbers = #tpu.dot_dimension_numbers<[1], [0], [0], [1], [0, 0, 1, 1], [], []>} : vector<8x1152xbf16>, vector<1152x128xbf16>, vector<8x128xf32> -> vector<8x128xf32>
    %c0_248 = arith.constant 0 : index
    %c0_249 = arith.constant 0 : index
    %749 = vector.load %arg4[%c0_248, %c0_249] : memref<8x128xf32, #tpu.memory_space<vmem>>, vector<8x128xf32>
    tpu.vector_store %arg4[%c0_248, %c0_249], %748 {strides = array<i32>} : memref<8x128xf32, #tpu.memory_space<vmem>>, vector<8x128xf32>,
    return
  }
  func.func @transform_0(%arg0: i32) -> (i32, i32) {
    %c0_i32 = arith.constant 0 : i32
    %c0_i32_0 = arith.constant 0 : i32
    return %arg0, %c0_i32 : i32, i32
  }
  func.func @transform_1(%arg0: i32) -> (i32, i32) {
    %c0_i32 = arith.constant 0 : i32
    %c0_i32_0 = arith.constant 0 : i32
    %c0_i32_1 = arith.constant 0 : i32
    return %c0_i32, %c0_i32_0 : i32, i32
  }
  func.func @transform_2(%arg0: i32) -> (i32, i32) {
    %c0_i32 = arith.constant 0 : i32
    %c0_i32_0 = arith.constant 0 : i32
    %c0_i32_1 = arith.constant 0 : i32
    return %c0_i32, %c0_i32_0 : i32, i32
  }
  func.func @transform_3(%arg0: i32) -> (i32, i32) {
    %c0_i32 = arith.constant 0 : i32
    %c0_i32_0 = arith.constant 0 : i32
    return %arg0, %c0_i32 : i32, i32
  }
}

</mosaic_0001>

<bundles_post_ra>
// kernel: tpu_custom_call.1
= control target key start
LH: loop header
LB: loop body
LE: loop exit
PB: predicated region body
PF: predicated region fallthrough
CT: control target
= control target key end

     0   :  { %8 = vsyncpa [#allocation3], 0  ;;  %s3037_s0 = inlined_call_operand.hbm [shape: f32[8,128], index: 0, kind: input, shape index: {}]   ;;  %s3038_s1 = inlined_call_operand.hbm [shape: bf16[1152,128], index: 1, kind: input, shape index: {}]   ;;  %s3039_s2 = inlined_call_operand.hbm [shape: bf16[1152,128], index: 2, kind: input, shape index: {}]   ;;  %s3040_s3 = inlined_call_operand.hbm [shape: f32[8,128], index: 3, kind: output, shape index: {}]  }
   0x1   :  { %9 = vsyncpa [#allocation6], 0 }
   0x2   :  { %10 = vsyncpa [#allocation4], 0  ;;  %s2731_s12 = smov [#allocation5]  }
   0x3   :  { %s26_s13 = sshll.u32 %s2731_s12, 4  ;;  %s27_s13 = int_to_ptr.vmem [resolvable:$true] %s26_s13 }
   0x4   :  { %s2653_s14 = scalar_lea.vmem %s27_s13, 9216  ;;  %p2658_p1 = scmp.lt.s32.totalorder %s27_s13, %s27_s13 }
   0x5   :  { %p2654_p0 = scmp.ne.s32.totalorder %s27_s13, %s2653_s14  ;;  %p2659_p2 = scmp.lt.s32.totalorder %s2653_s14, %s2653_s14 }
   0x7   :  { %p2660_p3 = por %p2659_p2, %p2658_p1 }
   0x9   :  { %p2661_p4 = pnand %p2660_p3, %p2654_p0 }
   0xb   :  { %2664 = shalt.err (!%p2661_p4)
}
   0xc   :  { %s2732_s15 = smov 64   ;;  %s2733_s16 = smov 4  }
   0xd   :  { %32 = dma.hbm_to_vmem [thread:$0]  %s3038_s1, 9216, %s27_s13, [#allocation6], %s2732_s15, %s2732_s15, %s2733_s16  }
   0xe   :  { %s2734_s19 = smov [#allocation2]   ;;  %s2735_s21 = smov [#allocation7]  }
   0xf   :  { %s17_s20 = sshll.u32 %s2734_s19, 4  ;;  %s38_s22 = sshll.u32 %s2735_s21, 4  ;;  %s18_s20 = int_to_ptr.vmem [resolvable:$true] %s17_s20  ;;  %s39_s22 = int_to_ptr.vmem [resolvable:$true] %s38_s22 }
  0x10   :  { %s2673_s23 = scalar_lea.vmem %s18_s20, 128  ;;  %p2678_p6 = scmp.lt.s32.totalorder %s18_s20, %s18_s20 }
  0x11   :  { %p2674_p5 = scmp.ne.s32.totalorder %s18_s20, %s2673_s23  ;;  %p2679_p7 = scmp.lt.s32.totalorder %s2673_s23, %s2673_s23 }
  0x13   :  { %p2680_p8 = por %p2679_p7, %p2678_p6 }
  0x15   :  { %p2681_p9 = pnand %p2680_p8, %p2674_p5 }
  0x17   :  { %2684 = shalt.err (!%p2681_p9)
}
  0x18   :  { %20 = dma.hbm_to_vmem [thread:$0]  %s3037_s0, 128, %s18_s20, [#allocation3]  }
  0x19   :  { %s2693_s26 = scalar_lea.vmem %s39_s22, 9216  ;;  %p2698_p11 = scmp.lt.s32.totalorder %s39_s22, %s39_s22 }
  0x1a   :  { %p2694_p10 = scmp.ne.s32.totalorder %s39_s22, %s2693_s26  ;;  %p2699_p12 = scmp.lt.s32.totalorder %s2693_s26, %s2693_s26 }
  0x1c   :  { %p2700_p13 = por %p2699_p12, %p2698_p11 }
  0x1e   :  { %p2701_p0 = pnand %p2700_p13, %p2694_p10 }
  0x20   :  { %2704 = shalt.err (!%p2701_p0)
}
  0x21   :  { %44 = dma.hbm_to_vmem [thread:$0]  %s3039_s2, 9216, %s39_s22, [#allocation6], %s2732_s15, %s2732_s15, %s2733_s16  }
  0x22   :  { %2725 = dma.done.wait [#allocation3], 128  }
  0x23   :  { %2726 = vsyncadd [#allocation3], 4294967168 }
  0x24   :  { %2727 = dma.done.wait [#allocation6], 18432  }
  0x25   :  { %2728 = vsyncadd [#allocation6], 4294948864  ;;  %v2493_v0 = vld [vmem:[#allocation5 + $0x78] sm:$0xff]   ;;  %v2497_v4 = vld [vmem:[#allocation5 + $0x70] sm:$0xff]   ;;  %v2736_v33 = vmov 0.0   ;;  %vm2737_vm12 = vmmov 0  }
  0x26   :  { %v2494_v1 = vld [vmem:[#allocation5 + $0x38] sm:$0xff]   ;;  %2251 = vmatprep.subr.bf16.mxu0 %v2493_v0  ;;  %v2498_v5 = vld [vmem:[#allocation5 + $0x30] sm:$0xff]   ;;  %v2501_v8 = vld [vmem:[#allocation5 + $0x68] sm:$0xff]   ;;  %s2738_s0 = smov [#allocation8]  }
  0x27   :  { %v2495_v2 = vld [vmem:[#allocation5 + $0xf8] sm:$0xff]   ;;  %2252 = vmatpush3.bf16.msra.mxu0 %v2494_v1  ;;  %v2499_v6 = vld [vmem:[#allocation5 + $0xf0] sm:$0xff]   ;;  %v2502_v9 = vld [vmem:[#allocation5 + $0x28] sm:$0xff]   ;;  %s2051_s2 = sshll.u32 %s2738_s0, 4  ;;  %s2052_s2 = int_to_ptr.vmem [resolvable:$true] %s2051_s2 }
  0x28   :  { %v2496_v3 = vld [vmem:[#allocation5 + $0xb8] sm:$0xff]   ;;  %2273 = vmatprep.subr.bf16.mxu1 %v2495_v2  ;;  %2253 = vmatprep.subr.bf16.mxu0 %v2497_v4  ;;  %v2500_v7 = vld [vmem:[#allocation5 + $0xb0] sm:$0xff]   ;;  %v2503_v10 = vld [vmem:[#allocation5 + $0xe8] sm:$0xff]   ;;  %s2705_s28 = scalar_lea.vmem %s2052_s2, 128  ;;  %p2710_p2 = scmp.lt.s32.totalorder %s2052_s2, %s2052_s2 }
  0x29   :  { %2274 = vmatpush3.bf16.msra.mxu1 %v2496_v3  ;;  %v2504_v11 = vld [vmem:[#allocation5 + $0xa8] sm:$0xff]   ;;  %v2505_v12 = vld [vmem:[#allocation5 + $0x60] sm:$0xff]   ;;  %v2509_v16 = vld [vmem:[#allocation5 + $0x58] sm:$0xff]   ;;  %p2706_p1 = scmp.ne.s32.totalorder %s2052_s2, %s2705_s28  ;;  %p2711_p3 = scmp.lt.s32.totalorder %s2705_s28, %s2705_s28 }
  0x2a   :  { %2275 = vmatprep.subr.bf16.mxu1 %v2499_v6  ;;  %v2506_v13 = vld [vmem:[#allocation5 + $0x20] sm:$0xff]   ;;  %v2510_v17 = vld [vmem:[#allocation5 + $0x18] sm:$0xff]   ;;  %v2513_v20 = vld [vmem:[#allocation5 + $0x50] sm:$0xff]  }
  0x2b   :  { %2254 = vmatpush3.bf16.msra.mxu0 %v2498_v5  ;;  %v2507_v14 = vld [vmem:[#allocation5 + $0xe0] sm:$0xff]   ;;  %v2511_v18 = vld [vmem:[#allocation5 + $0xd8] sm:$0xff]   ;;  %v2514_v21 = vld [vmem:[#allocation5 + $0x10] sm:$0xff]   ;;  %p2712_p4 = por %p2711_p3, %p2710_p2 }
  0x2c   :  { %2255 = vmatprep.subr.bf16.mxu0 %v2501_v8  ;;  %v2508_v15 = vld [vmem:[#allocation5 + $0xa0] sm:$0xff]   ;;  %v2512_v19 = vld [vmem:[#allocation5 + $0x98] sm:$0xff]   ;;  %v2515_v22 = vld [vmem:[#allocation5 + $0xd0] sm:$0xff]  }
  0x2d   :  { %2276 = vmatpush3.bf16.msra.mxu1 %v2500_v7  ;;  %v2516_v23 = vld [vmem:[#allocation5 + $0x90] sm:$0xff]   ;;  %v2517_v24 = vld [vmem:[#allocation5 + $0x48] sm:$0xff]   ;;  %v2521_v28 = vld [vmem:[#allocation5 + $0x40] sm:$0xff]   ;;  %p2713_p5 = pnand %p2712_p4, %p2706_p1 }
  0x2e   :  { %2277 = vmatprep.subr.bf16.mxu1 %v2503_v10  ;;  %v2518_v25 = vld [vmem:[#allocation5 + $0x8] sm:$0xff]   ;;  %v2522_v29 = vld [vmem:[#allocation5] sm:$0xff]   ;;  %v2768_v32 = vld [vmem:[#allocation2] sm:$0xff] }
  0x2f   :  { %2256 = vmatpush3.bf16.msra.mxu0 %v2502_v9  ;;  %v2519_v26 = vld [vmem:[#allocation5 + $0xc8] sm:$0xff]   ;;  %v2523_v30 = vld [vmem:[#allocation5 + $0xc0] sm:$0xff]   ;;  %vm63_vm0 = vcmp.ge.f32.partialorder %v2768_v32, -2.2  ;;  %vm66_vm1 = vcmp.ge.f32.partialorder %v2768_v32, -1.8 }
  0x30   :  { %2257 = vmatprep.subr.bf16.mxu0 %v2505_v12  ;;  %v2520_v27 = vld [vmem:[#allocation5 + $0x88] sm:$0xff]   ;;  %v2524_v31 = vld [vmem:[#allocation5 + $0x80] sm:$0xff]   ;;  %vm69_vm2 = vcmp.ge.f32.partialorder %v2768_v32, -1.4  ;;  %v2062_v34 = vsel %vm63_vm0, 1.0, %v2736_v33  ;;  %v2063_v35 = vsel %vm66_vm1, 1.0, %v2736_v33 }
  0x31   :  { %2278 = vmatpush3.bf16.msra.mxu1 %v2504_v11  ;;  %v2064_v36 = vsel %vm69_vm2, 1.0, %v2736_v33  ;;  %vm72_vm3 = vcmp.ge.f32.partialorder %v2768_v32, -1.0  ;;  %v2525_v37 = vld [vmem:[#allocation5 + $0x178] sm:$0xff]   ;;  %vm75_vm4 = vcmp.ge.f32.partialorder %v2768_v32, -0.6  ;;  %v99_v39 = vsub.f32 %v2062_v34, %v2063_v35 }
  0x32   :  { %2279 = vmatprep.subr.bf16.mxu1 %v2507_v14  ;;  %v2065_v38 = vsel %vm72_vm3, 1.0, %v2736_v33  ;;  %v2527_v40 = vld [vmem:[#allocation5 + $0x1f8] sm:$0xff]   ;;  %v2066_v41 = vsel %vm75_vm4, 1.0, %v2736_v33  ;;  %v100_v42 = vsub.f32 %v2063_v35, %v2064_v36  ;;  %v2074_v43 = vadd.f32 2.2, %v2768_v32 }
  0x33   :  { %2258 = vmatpush3.bf16.msra.mxu0 %v2506_v13  ;;  %v113_v44 = vsub.f32 -1.4, %v2768_v32  ;;  %v101_v45 = vsub.f32 %v2064_v36, %v2065_v38  ;;  %v2783_v46 = vadd.f32 1.8, %v2768_v32  ;;  %v120_v47 = vsub.f32 -1.0, %v2768_v32 }
  0x34   :  { %2259 = vmatprep.subr.bf16.mxu0 %v2509_v16  ;;  %v2076_v48 = vadd.f32 1.4, %v2768_v32  ;;  %v102_v49 = vsub.f32 %v2065_v38, %v2066_v41  ;;  %v111_v50 = vmul.f32 2.5, %v2074_v43  ;;  %v127_v52 = vsub.f32 -0.6, %v2768_v32 }
  0x35   :  { %2280 = vmatpush3.bf16.msra.mxu1 %v2508_v15  ;;  %v114_v51 = vmul.f32 2.5, %v113_v44  ;;  %v118_v53 = vmul.f32 2.5, %v2783_v46  ;;  %v121_v54 = vmul.f32 2.5, %v120_v47  ;;  %v180_v56 = vmul.f32 1.25, %v2074_v43 }
  0x36   :  { %2281 = vmatprep.subr.bf16.mxu1 %v2511_v18  ;;  %v125_v55 = vmul.f32 2.5, %v2076_v48  ;;  %v112_v57 = vmul.f32 %v111_v50, %v99_v39  ;;  %v128_v59 = vmul.f32 2.5, %v127_v52  ;;  %v182_v60 = vmul.f32 1.25, %v120_v47 }
  0x37   :  { %2260 = vmatpush3.bf16.msra.mxu0 %v2510_v17  ;;  %v115_v58 = vmul.f32 %v114_v51, %v100_v42  ;;  %v119_v61 = vmul.f32 %v118_v53, %v100_v42  ;;  %v122_v62 = vmul.f32 %v121_v54, %v101_v45  ;;  %v185_v0 = vmul.f32 1.25, %v2783_v46 }
  0x38   :  { %2261 = vmatprep.subr.bf16.mxu0 %v2513_v20  ;;  %v126_v63 = vmul.f32 %v125_v55, %v101_v45  ;;  %v129_v2 = vmul.f32 %v128_v59, %v102_v49  ;;  %v187_v3 = vmul.f32 1.25, %v127_v52  ;;  %v225_v5 = vmul.f32 0.8333333, %v2074_v43 }
  0x39   :  { %2282 = vmatpush3.bf16.msra.mxu1 %v2512_v19  ;;  %v116_v1 = vadd.f32 %v115_v58, %v112_v57  ;;  %v123_v4 = vadd.f32 %v122_v62, %v119_v61  ;;  %vm78_vm5 = vcmp.ge.f32.partialorder %v2768_v32, -0.2  ;;  %vm81_vm6 = vcmp.ge.f32.partialorder %v2768_v32, 0.2  ;;  %v2531_v62 = vld [vmem:[#allocation5 + $0x1f0] sm:$0xff]  }
  0x3a   :  { %2283 = vmatprep.subr.bf16.mxu1 %v2515_v22  ;;  %v130_v6 = vadd.f32 %v129_v2, %v126_v63  ;;  %v2067_v8 = vsel %vm78_vm5, 1.0, %v2736_v33  ;;  %v2794_v9 = vsel %vm81_vm6, 1.0, %v2736_v33  ;;  %v227_v12 = vmul.f32 0.8333333, %v127_v52 }
  0x3b   :  { %2262 = vmatpush3.bf16.msra.mxu0 %v2514_v21  ;;  %v181_v7 = vmul.f32 %v180_v56, %v116_v1  ;;  %v183_v10 = vmul.f32 %v182_v60, %v123_v4  ;;  %v186_v11 = vmul.f32 %v185_v0, %v123_v4  ;;  %v103_v14 = vsub.f32 %v2066_v41, %v2067_v8  ;;  %v2528_v60 = vld [vmem:[#allocation5 + $0x1b8] sm:$0xff]   ;;  %v2532_v1 = vld [vmem:[#allocation5 + $0x1b0] sm:$0xff]   ;;  %v2535_v4 = vld [vmem:[#allocation5 + $0x1e8] sm:$0xff]  }
  0x3c   :  { %2263 = vmatprep.subr.bf16.mxu0 %v2517_v24  ;;  %v188_v13 = vmul.f32 %v187_v3, %v130_v6  ;;  %v2797_v15 = vsub.f32 %v2067_v8, %v2794_v9  ;;  %v2800_v16 = vadd.f32 1.0, %v2768_v32  ;;  %v134_v18 = vsub.f32 -0.2, %v2768_v32 }
  0x3d   :  { %2284 = vmatpush3.bf16.msra.mxu1 %v2516_v23  ;;  %v184_v17 = vadd.f32 %v183_v10, %v181_v7  ;;  %v2804_v19 = vadd.f32 0.6, %v2768_v32  ;;  %v141_v20 = vsub.f32 0.2, %v2768_v32  ;;  %v190_v23 = vmul.f32 1.25, %v2076_v48 }
  0x3e   :  { %2285 = vmatprep.subr.bf16.mxu1 %v2519_v26  ;;  %v189_v21 = vadd.f32 %v188_v13, %v186_v11  ;;  %v132_v22 = vmul.f32 2.5, %v2800_v16  ;;  %v2061_v44 = vmul.f32 -1.442695, %v2768_v32  ;;  %v230_v45 = vmul.f32 0.8333333, %v2783_v46 }
  0x3f   :  { %2264 = vmatpush3.bf16.msra.mxu0 %v2518_v25  ;;  %v226_v24 = vmul.f32 %v225_v5, %v184_v17  ;;  %v135_v25 = vmul.f32 2.5, %v134_v18  ;;  %v139_v26 = vmul.f32 2.5, %v2804_v19  ;;  %v191_v39 = vmul.f32 %v190_v23, %v130_v6  ;;  %v2536_v6 = vld [vmem:[#allocation5 + $0x1a8] sm:$0xff]   ;;  %v2543_v23 = vld [vmem:[#allocation5 + $0x1d8] sm:$0xff]  }
  0x40   :  { %2265 = vmatprep.subr.bf16.mxu0 %v2521_v28  ;;  %v228_v28 = vmul.f32 %v227_v12, %v189_v21  ;;  %v237_v41 = vmul.f32 0.8333333, %v141_v20  ;;  %2637 = vpow2.f32 %v2061_v44  ;;  %v231_v55 = vmul.f32 %v230_v45, %v189_v21  ;;  %v2539_v12 = vld [vmem:[#allocation5 + $0x1e0] sm:$0xff]  }
  0x41   :  { %2286 = vmatpush3.bf16.msra.mxu1 %v2520_v27  ;;  %v142_v27 = vmul.f32 2.5, %v141_v20  ;;  %v136_v34 = vmul.f32 %v135_v25, %v103_v14  ;;  %v140_v35 = vmul.f32 %v139_v26, %v103_v14  ;;  %vm84_vm7 = vcmp.ge.f32.partialorder %v2768_v32, 0.6 }
  0x42   :  { %2287 = vmatprep.subr.bf16.mxu1 %v2523_v30  ;;  %v192_v30 = vmul.f32 1.25, %v134_v18  ;;  %v229_v38 = vadd.f32 %v228_v28, %v226_v24  ;;  %vm87_vm8 = vcmp.ge.f32.partialorder %v2768_v32, 1.0  ;;  %v2069_v63 = vsel %vm84_vm7, 1.0, %v2736_v33 }
  0x43   :  { %2266 = vmatpush3.bf16.msra.mxu0 %v2522_v29  ;;  %v133_v29 = vmul.f32 %v132_v22, %v102_v49  ;;  %v143_v36 = vmul.f32 %v142_v27, %v2797_v15  ;;  %v232_v49 = vmul.f32 0.8333333, %v134_v18  ;;  %v155_v0 = vsub.f32 1.0, %v2768_v32  ;;  %v2540_v18 = vld [vmem:[#allocation5 + $0x1a0] sm:$0xff]  }
  0x44   :  { %2295 = vmatprep.subr.bf16.mxu0 %v2525_v37  ;;  %v197_v37 = vmul.f32 1.25, %v141_v20  ;;  %v266_v47 = vpack.c.bf16 %v229_v38, %v229_v38  ;;  %v2070_v2 = vsel %vm87_vm8, 1.0, %v2736_v33  ;;  %v200_v10 = vmul.f32 1.25, %v2804_v19 }
  0x45   :  { %2288 = vmatpush3.bf16.msra.mxu1 %v2524_v31  ;;  %v195_v31 = vmul.f32 1.25, %v2800_v16  ;;  %v137_v42 = vadd.f32 %v136_v34, %v133_v29  ;;  %v144_v43 = vadd.f32 %v143_v36, %v140_v35  ;;  %v106_v7 = vsub.f32 %v2069_v63, %v2070_v2  ;;  %v2547_v35 = vld [vmem:[#allocation5 + $0x1d0] sm:$0xff]  }
  0x46   :  { %2317 = vmatprep.subr.bf16.mxu1 %v2527_v40  ;;  %v235_v40 = vmul.f32 0.8333333, %v2076_v48  ;;  %882 = vmatprep.mubr.bf16.mxu0 %v266_v47  ;;  %v156_v8 = vmul.f32 2.5, %v155_v0  ;;  %v2082_v11 = vadd.f32 -1.0, %v2768_v32  ;;  %v2824_v13 = vmul.f32 0.8333333, %v2800_v16 }
  0x47   :  { %v193_v50 = vmul.f32 %v192_v30, %v137_v42  ;;  %v196_v51 = vmul.f32 %v195_v31, %v137_v42  ;;  %v198_v52 = vmul.f32 %v197_v37, %v144_v43  ;;  %v2827_v14 = vadd.f32 0.2, %v2768_v32  ;;  %v2544_v30 = vld [vmem:[#allocation5 + $0x198] sm:$0xff]  }
  0x48   :  { %v105_v17 = vsub.f32 %v2794_v9, %v2069_v63  ;;  %v148_v20 = vsub.f32 0.6, %v2768_v32  ;;  %v2832_v21 = vadd.f32 -0.2, %v2768_v32  ;;  %v157_v22 = vmul.f32 %v156_v8, %v106_v7  ;;  %v2555_v8 = vld [vmem:[#allocation5 + $0x1c0] sm:$0xff]  }
  0x49   :  { %v194_v53 = vadd.f32 %v193_v50, %v191_v39  ;;  %v2813_v54 = vadd.f32 %v198_v52, %v196_v51  ;;  %v146_v24 = vmul.f32 2.5, %v2827_v14  ;;  %v201_v25 = vmul.f32 %v200_v10, %v144_v43  ;;  %v2548_v52 = vld [vmem:[#allocation5 + $0x190] sm:$0xff]  }
  0x4a   :  { %v207_v26 = vmul.f32 1.25, %v155_v0  ;;  %v167_v16 = vmul.f32 2.5, %v2082_v11  ;;  %v149_v27 = vmul.f32 2.5, %v148_v20  ;;  %v153_v28 = vmul.f32 2.5, %v2832_v21 }
  0x4b   :  { %v236_v56 = vmul.f32 %v235_v40, %v194_v53  ;;  %v238_v48 = vmul.f32 %v237_v41, %v2813_v54  ;;  %v233_v57 = vmul.f32 %v232_v49, %v194_v53  ;;  %v205_v9 = vmul.f32 1.25, %v2827_v14 }
  0x4c   :  { %v2837_v29 = vmul.f32 1.25, %v2082_v11  ;;  %v147_v31 = vmul.f32 %v146_v24, %v2797_v15  ;;  %v202_v34 = vmul.f32 1.25, %v148_v20  ;;  %vm90_vm9 = vcmp.ge.f32.partialorder %v2768_v32, 1.4  ;;  %v2530_v24 = vld [vmem:[#allocation5 + $0x130] sm:$0xff]  }
  0x4d   :  { %v239_v58 = vadd.f32 %v238_v48, %v236_v56  ;;  %v234_v59 = vadd.f32 %v233_v57, %v231_v55  ;;  %v2638_v3 = vpop.eup %2637  ;;  %vm93_vm10 = vcmp.ge.f32.partialorder %v2768_v32, 1.8  ;;  %v150_v36 = vmul.f32 %v149_v27, %v105_v17 }
  0x4e   :  { %v59_v5 = vadd.f32 1.0, %v2638_v3  ;;  %v154_v37 = vmul.f32 %v153_v28, %v105_v17  ;;  %v2071_v38 = vsel %vm90_vm9, 1.0, %v2736_v33  ;;  %v2844_v39 = vsel %vm93_vm10, 1.0, %v2736_v33  ;;  %v2533_v28 = vld [vmem:[#allocation5 + $0x168] sm:$0xff]  }
  0x4f   :  { %v268_v46 = vpack.c.bf16 %v239_v58, %v239_v58  ;;  %v267_v61 = vpack.c.bf16 %v234_v59, %v234_v59  ;;  %v245_v40 = vmul.f32 0.8333333, %v2804_v19  ;;  %v247_v41 = vmul.f32 0.8333333, %v155_v0 }
  0x50   :  { %2639 = vrcp.f32 %v59_v5  ;;  %v107_v42 = vsub.f32 %v2070_v2, %v2071_v38  ;;  %v2848_v15 = vadd.f32 -0.6, %v2768_v32  ;;  %v151_v43 = vadd.f32 %v150_v36, %v147_v31  ;;  %v2552_v5 = vld [vmem:[#allocation5 + $0x188] sm:$0xff]  }
  0x51   :  { %922 = vmatprep.mubr.bf16.mxu1 %v268_v46  ;;  %v158_v44 = vadd.f32 %v157_v22, %v154_v37  ;;  %v2850_v45 = vmul.f32 0.8333333, %v148_v20  ;;  %v162_v47 = vsub.f32 1.4, %v2768_v32  ;;  %v2854_v49 = vsub.f32 %v2071_v38, %v2844_v39 }
  0x52   :  { %923 = vmatmul.mubr.bf16.vlgmr.msra.gmra.mxu1 %v267_v61  ;;  %v160_v50 = vmul.f32 2.5, %v2848_v15  ;;  %v169_v51 = vsub.f32 1.8, %v2768_v32  ;;  %v210_v19 = vmul.f32 1.25, %v2832_v21  ;;  %v203_v53 = vmul.f32 %v202_v34, %v151_v43  ;;  %v2526_v61 = vld [vmem:[#allocation5 + $0x138] sm:$0xff]  }
  0x53   :  { %2318 = vmatpush3.bf16.msra.mxu1 %v2528_v60  ;;  %v206_v55 = vmul.f32 %v205_v9, %v151_v43  ;;  %v208_v56 = vmul.f32 %v207_v26, %v158_v44  ;;  %v163_v48 = vmul.f32 2.5, %v162_v47  ;;  %v168_v58 = vmul.f32 %v167_v16, %v107_v42  ;;  %v2556_v9 = vld [vmem:[#allocation5 + $0x180] sm:$0xff]  }
  0x54   :  { %2319 = vmatprep.subr.bf16.mxu1 %v2531_v62  ;;  %v161_v57 = vmul.f32 %v160_v50, %v106_v7  ;;  %v170_v59 = vmul.f32 2.5, %v169_v51  ;;  %v212_v60 = vmul.f32 1.25, %v162_v47  ;;  %v2551_v62 = vld [vmem:[#allocation5 + $0x1c8] sm:$0xff]   ;;  %v2859_v63 = vadd.f32 %v203_v53, %v201_v25 }
  0x55   :  { %v209_v0 = vadd.f32 %v208_v56, %v206_v55  ;;  %v215_v2 = vmul.f32 1.25, %v2848_v15  ;;  %vm96_vm11 = vcmp.ge.f32.partialorder %v2768_v32, 2.2  ;;  %v217_v7 = vmul.f32 1.25, %v169_v51  ;;  %v2538_v55 = vld [vmem:[#allocation5 + $0x120] sm:$0xff]  }
  0x56   :  { %v246_v10 = vmul.f32 %v245_v40, %v2859_v63  ;;  %v211_v17 = vmul.f32 %v210_v19, %v158_v44  ;;  %v255_v22 = vmul.f32 0.8333333, %v2832_v21  ;;  %v257_v27 = vmul.f32 0.8333333, %v169_v51  ;;  %v2537_v51 = vld [vmem:[#allocation5 + $0x160] sm:$0xff]  }
  0x57   :  { %2320 = vmatpush3.bf16.msra.mxu1 %v2532_v1  ;;  %v164_v1 = vmul.f32 %v163_v48, %v107_v42  ;;  %v248_v11 = vmul.f32 %v247_v41, %v209_v0  ;;  %v252_v31 = vmul.f32 0.8333333, %v162_v47  ;;  %v2083_v34 = vadd.f32 -1.4, %v2768_v32  ;;  %v2534_v42 = vld [vmem:[#allocation5 + $0x128] sm:$0xff]  }
  0x58   :  { %2321 = vmatprep.subr.bf16.mxu1 %v2535_v4  ;;  %v2529_v4 = vld [vmem:[#allocation5 + $0x170] sm:$0xff]   ;;  %v2073_v37 = vsel %vm96_vm11, 1.0, %v2736_v33  ;;  %v2879_v41 = vmul.f32 0.8333333, %v2848_v15  ;;  %v2541_v15 = vld [vmem:[#allocation5 + $0x158] sm:$0xff]  }
  0x59   :  { %v249_v25 = vadd.f32 %v248_v11, %v246_v10  ;;  %v174_v40 = vmul.f32 2.5, %v2083_v34  ;;  %v2562_v11 = vld [vmem:[#allocation5 + $0x210] sm:$0xff]   ;;  %v2575_v34 = vld [vmem:[#allocation7 + $0x98] sm:$0xff]  }
  0x5b   :  { %2322 = vmatpush3.bf16.msra.mxu1 %v2536_v6  ;;  %v171_v6 = vmul.f32 %v170_v59, %v2854_v49  ;;  %v2546_v59 = vld [vmem:[#allocation5 + $0x110] sm:$0xff]  }
  0x5c   :  { %2323 = vmatprep.subr.bf16.mxu1 %v2539_v12  ;;  %v165_v12 = vadd.f32 %v164_v1, %v161_v57  ;;  %v2542_v57 = vld [vmem:[#allocation5 + $0x118] sm:$0xff]   ;;  %v2554_v1 = vld [vmem:[#allocation5 + $0x100] sm:$0xff]  }
  0x5d   :  { %v2640_v46 = vpop.eup %2639  ;;  %v2866_v20 = vadd.f32 %v171_v6, %v168_v58  ;;  %v2545_v58 = vld [vmem:[#allocation5 + $0x150] sm:$0xff]   ;;  %v109_v6 = vsub.f32 %v2844_v39, %v2073_v37  ;;  %v2561_v39 = vld [vmem:[#allocation5 + $0x218] sm:$0xff]  }
  0x5e   :  { %v62_v3 = vmul.f32 %v2640_v46, %v2768_v32  ;;  %v213_v26 = vmul.f32 %v212_v60, %v165_v12  ;;  %v216_v16 = vmul.f32 %v215_v2, %v165_v12  ;;  %v2549_v60 = vld [vmem:[#allocation5 + $0x148] sm:$0xff]   ;;  %v2580_v37 = vld [vmem:[#allocation7 + $0x30] sm:$0xff]  }
  0x5f   :  { %2324 = vmatpush3.bf16.msra.mxu1 %v2540_v18  ;;  %v2550_v46 = vld [vmem:[#allocation5 + $0x108] sm:$0xff]  }
  0x60   :  { %2325 = vmatprep.subr.bf16.mxu1 %v2543_v23  ;;  %v265_v18 = vpack.c.bf16 %v62_v3, %v62_v3  ;;  %v250_v23 = vmul.f32 0.8333333, %v2827_v14  ;;  %v214_v36 = vadd.f32 %v213_v26, %v211_v17  ;;  %v176_v14 = vsub.f32 2.2, %v2768_v32  ;;  %v2557_v3 = vld [vmem:[#allocation5 + $0x238] sm:$0xff]   ;;  %v2568_v26 = vld [vmem:[#allocation7 + $0xb0] sm:$0xff]  }
  0x62   :  { %883 = vmatmul.mubr.bf16.vlgmr.msra.gmra.mxu0 %v265_v18  ;;  %v251_v21 = vmul.f32 %v250_v23, %v209_v0  ;;  %v256_v43 = vmul.f32 %v255_v22, %v214_v36  ;;  %v253_v44 = vmul.f32 %v252_v31, %v214_v36  ;;  %v177_v47 = vmul.f32 2.5, %v176_v14  ;;  %v2563_v18 = vld [vmem:[#allocation5 + $0x208] sm:$0xff]   ;;  %v2565_v23 = vld [vmem:[#allocation7 + $0xf8] sm:$0xff]   ;;  %v2577_v36 = vld [vmem:[#allocation7 + $0xd0] sm:$0xff]  }
  0x63   :  { %2326 = vmatpush3.bf16.msra.mxu1 %v2544_v30  ;;  %v218_v30 = vmul.f32 %v217_v7, %v2866_v20  ;;  %2296 = vmatpush3.bf16.msra.mxu0 %v2526_v61  ;;  %v222_v50 = vmul.f32 1.25, %v176_v14  ;;  %v241_v61 = vmul.f32 %v2824_v13, %v2813_v54  ;;  %v243_v0 = vmul.f32 %v2850_v45, %v2859_v63  ;;  %v2559_v54 = vld [vmem:[#allocation5 + $0x228] sm:$0xff]   ;;  %v2560_v63 = vld [vmem:[#allocation5 + $0x220] sm:$0xff]   ;;  %v2574_v31 = vld [vmem:[#allocation7 + $0x78] sm:$0xff]  }
  0x64   :  { %2327 = vmatprep.subr.bf16.mxu1 %v2547_v35  ;;  %v270_v35 = vpack.c.bf16 %v249_v25, %v249_v25  ;;  %2297 = vmatprep.subr.bf16.mxu0 %v2529_v4  ;;  %v254_v32 = vadd.f32 %v253_v44, %v251_v21  ;;  %v175_v13 = vmul.f32 %v174_v40, %v2854_v49  ;;  %v2567_v25 = vld [vmem:[#allocation7 + $0xf0] sm:$0xff]   ;;  %v2582_v40 = vld [vmem:[#allocation7 + $0x68] sm:$0xff]   ;;  %v2586_v44 = vld [vmem:[#allocation7 + $0x60] sm:$0xff]  }
  0x65   :  { %v2876_v38 = vadd.f32 %v218_v30, %v216_v16  ;;  %v244_v2 = vadd.f32 %v243_v0, %v241_v61  ;;  %v178_v45 = vmul.f32 %v177_v47, %v109_v6  ;;  %v2569_v16 = vld [vmem:[#allocation7 + $0xe8] sm:$0xff]   ;;  %v2573_v30 = vld [vmem:[#allocation7 + $0xd8] sm:$0xff]   ;;  %v2578_v21 = vld [vmem:[#allocation7 + $0x70] sm:$0xff]  }
  0x66   :  { %962 = vmatprep.mubr.bf16.mxu0 %v270_v35  ;;  %v271_v56 = vpack.c.bf16 %v254_v32, %v254_v32  ;;  %v2576_v35 = vld [vmem:[#allocation7 + $0x38] sm:$0xff]   ;;  %v2587_v47 = vld [vmem:[#allocation7 + $0x80] sm:$0xff]  }
  0x67   :  { %2328 = vmatpush3.bf16.msra.mxu1 %v2548_v52  ;;  %v258_v19 = vmul.f32 %v257_v27, %v2876_v38  ;;  %v262_v52 = vmul.f32 0.8333333, %v176_v14  ;;  %2298 = vmatpush3.bf16.msra.mxu0 %v2530_v24  ;;  %v269_v4 = vpack.c.bf16 %v244_v2, %v244_v2  ;;  %v179_v7 = vadd.f32 %v178_v45, %v175_v13  ;;  %v2566_v24 = vld [vmem:[#allocation7 + $0xb8] sm:$0xff]   ;;  %v2570_v27 = vld [vmem:[#allocation7 + $0xa8] sm:$0xff]   ;;  %v2579_v14 = vld [vmem:[#allocation7 + $0x90] sm:$0xff]  }
  0x68   :  { %2329 = vmatprep.subr.bf16.mxu1 %v2551_v62  ;;  %2299 = vmatprep.subr.bf16.mxu0 %v2533_v28  ;;  %v2553_v62 = vld [vmem:[#allocation5 + $0x140] sm:$0xff]   ;;  %v261_v49 = vmul.f32 %v2879_v41, %v2876_v38  ;;  %v2581_v38 = vld [vmem:[#allocation7 + $0xc8] sm:$0xff]   ;;  %v2606_v61 = vld [vmem:[#allocation7 + $0x178] sm:$0xff]  }
  0x69   :  { %v259_v53 = vadd.f32 %v258_v19, %v256_v43  ;;  %v223_v10 = vmul.f32 %v222_v50, %v179_v7  ;;  %v2571_v28 = vld [vmem:[#allocation7 + $0xe0] sm:$0xff]   ;;  %v2583_v41 = vld [vmem:[#allocation7 + $0x88] sm:$0xff]   ;;  %v2590_v19 = vld [vmem:[#allocation7 + $0x58] sm:$0xff]  }
  0x6a   :  { %v2585_v43 = vld [vmem:[#allocation7 + $0xc0] sm:$0xff]  }
  0x6b   :  { %2330 = vmatpush3.bf16.msra.mxu1 %v2552_v5  ;;  %v272_v48 = vpack.c.bf16 %v259_v53, %v259_v53  ;;  %2300 = vmatpush3.bf16.msra.mxu0 %v2534_v42  ;;  %v2558_v5 = vld [vmem:[#allocation5 + $0x230] sm:$0xff]   ;;  %v2584_v42 = vld [vmem:[#allocation7 + $0x28] sm:$0xff]   ;;  %v2588_v50 = vld [vmem:[#allocation7 + $0x20] sm:$0xff]  }
  0x6c   :  { %2331 = vmatprep.subr.bf16.mxu1 %v2555_v8  ;;  %2301 = vmatprep.subr.bf16.mxu0 %v2537_v51  ;;  %v221_v8 = vmul.f32 %v2837_v29, %v2866_v20  ;;  %v2564_v29 = vld [vmem:[#allocation5 + $0x200] sm:$0xff]   ;;  %v2589_v51 = vld [vmem:[#allocation7 + $0x1f8] sm:$0xff]  }
  0x6d   :  { %1002 = vmatprep.mubr.bf16.mxu1 %v272_v48  ;;  %v2594_v48 = vld [vmem:[#allocation7 + $0x50] sm:$0xff]  }
  0x6e   :  { %v224_v12 = vadd.f32 %v223_v10, %v221_v8 }
  0x6f   :  { %2332 = vmatpush3.bf16.msra.mxu1 %v2556_v9  ;;  %2302 = vmatpush3.bf16.msra.mxu0 %v2538_v55  ;;  %v2572_v9 = vld [vmem:[#allocation7 + $0xa0] sm:$0xff]  }
  0x70   :  { %2303 = vmatprep.subr.bf16.mxu0 %v2541_v15  ;;  %v263_v17 = vmul.f32 %v262_v52, %v224_v12  ;;  %2348 = vmatprep.subr.bf16.mxu1 %v2574_v31  ;;  %v2592_v52 = vld [vmem:[#allocation7 + $0x18] sm:$0xff]  }
  0x72   :  { %1003 = vmatmul.mubr.bf16.vlgmr.msra.gmra.mxu1 %v271_v56  ;;  %v264_v22 = vadd.f32 %v263_v17, %v261_v49 }
  0x73   :  { %2304 = vmatpush3.bf16.msra.mxu0 %v2542_v57  ;;  %2349 = vmatpush3.bf16.msra.mxu1 %v2576_v35  ;;  %v2596_v57 = vld [vmem:[#allocation7 + $0x10] sm:$0xff]  }
  0x74   :  { %2305 = vmatprep.subr.bf16.mxu0 %v2545_v58  ;;  %v273_v20 = vpack.c.bf16 %v264_v22, %v264_v22  ;;  %2350 = vmatprep.subr.bf16.mxu1 %v2578_v21  ;;  %v2598_v58 = vld [vmem:[#allocation7 + $0x48] sm:$0xff]  }
  0x77   :  { %2306 = vmatpush3.bf16.msra.mxu0 %v2546_v59  ;;  %2351 = vmatpush3.bf16.msra.mxu1 %v2580_v37  ;;  %v2600_v59 = vld [vmem:[#allocation7 + $0x8] sm:$0xff]  }
  0x78   :  { %2307 = vmatprep.subr.bf16.mxu0 %v2549_v60  ;;  %2352 = vmatprep.subr.bf16.mxu1 %v2582_v40  ;;  %v2602_v60 = vld [vmem:[#allocation7 + $0x40] sm:$0xff]  }
  0x7b   :  { %2308 = vmatpush3.bf16.msra.mxu0 %v2550_v46  ;;  %2353 = vmatpush3.bf16.msra.mxu1 %v2584_v42  ;;  %v2604_v46 = vld [vmem:[#allocation7] sm:$0xff]  }
  0x7c   :  { %2309 = vmatprep.subr.bf16.mxu0 %v2553_v62  ;;  %2354 = vmatprep.subr.bf16.mxu1 %v2586_v44 }
  0x7f   :  { %2310 = vmatpush3.bf16.msra.mxu0 %v2554_v1  ;;  %2355 = vmatpush3.bf16.msra.mxu1 %v2588_v50 }
  0x80   :  { %2445 = vmatprep.subr.bf16.mxu0 %v2736_v33  ;;  %2356 = vmatprep.subr.bf16.mxu1 %v2590_v19 }
  0x82   :  { %963 = vmatmul.mubr.bf16.vlgmr.msra.gmra.mxu0 %v269_v4 }
  0x83   :  { %2446 = vmatpush3.bf16.msra.mxu0 %v2557_v3  ;;  %2461 = vmatprep.mubr.msk.bf16.mxu0 %vm2737_vm12, %v2736_v33 }
  0x84   :  { %2447 = vmatprep.subr.bf16.mxu0 %v2736_v33  ;;  %2357 = vmatpush3.bf16.msra.mxu1 %v2592_v52 }
  0x85   :  { %2358 = vmatprep.subr.bf16.mxu1 %v2594_v48 }
  0x87   :  { %2448 = vmatpush3.bf16.msra.mxu0 %v2558_v5 }
  0x88   :  { %2449 = vmatprep.subr.bf16.mxu0 %v2736_v33  ;;  %2359 = vmatpush3.bf16.msra.mxu1 %v2596_v57 }
  0x89   :  { %2360 = vmatprep.subr.bf16.mxu1 %v2598_v58 }
  0x8b   :  { %2450 = vmatpush3.bf16.msra.mxu0 %v2559_v54 }
  0x8c   :  { %2451 = vmatprep.subr.bf16.mxu0 %v2736_v33  ;;  %2361 = vmatpush3.bf16.msra.mxu1 %v2600_v59 }
  0x8d   :  { %2362 = vmatprep.subr.bf16.mxu1 %v2602_v60 }
  0x8f   :  { %2452 = vmatpush3.bf16.msra.mxu0 %v2560_v63 }
  0x90   :  { %2453 = vmatprep.subr.bf16.mxu0 %v2736_v33  ;;  %2363 = vmatpush3.bf16.msra.mxu1 %v2604_v46 }
  0x91   :  { %2392 = vmatprep.subr.bf16.mxu1 %v2606_v61 }
  0x93   :  { %2454 = vmatpush3.bf16.msra.mxu0 %v2561_v39 }
  0x94   :  { %2455 = vmatprep.subr.bf16.mxu0 %v2736_v33 }
  0x97   :  { %2456 = vmatpush3.bf16.msra.mxu0 %v2562_v11 }
  0x98   :  { %2457 = vmatprep.subr.bf16.mxu0 %v2736_v33 }
  0x9b   :  { %2458 = vmatpush3.bf16.msra.mxu0 %v2563_v18 }
  0x9c   :  { %2459 = vmatprep.subr.bf16.mxu0 %v2736_v33 }
  0x9f   :  { %2460 = vmatpush3.bf16.msra.mxu0 %v2564_v29 }
  0xa0   :  { %2370 = vmatprep.subr.bf16.mxu0 %v2565_v23 }
  0xa2   :  { %2462 = vmatmul.mubr.bf16.vlgmr.msra.gmra.mxu0 %v273_v20 }
  0xa3   :  { %2371 = vmatpush3.bf16.msra.mxu0 %v2566_v24 }
  0xa4   :  { %2372 = vmatprep.subr.bf16.mxu0 %v2567_v25 }
  0xa7   :  { %2373 = vmatpush3.bf16.msra.mxu0 %v2568_v26 }
  0xa8   :  { %2374 = vmatprep.subr.bf16.mxu0 %v2569_v16 }
  0xab   :  { %2375 = vmatpush3.bf16.msra.mxu0 %v2570_v27 }
  0xac   :  { %2376 = vmatprep.subr.bf16.mxu0 %v2571_v28 }
  0xaf   :  { %2377 = vmatpush3.bf16.msra.mxu0 %v2572_v9 }
  0xb0   :  { %2378 = vmatprep.subr.bf16.mxu0 %v2573_v30 }
  0xb3   :  { %2379 = vmatpush3.bf16.msra.mxu0 %v2575_v34 }
  0xb4   :  { %2380 = vmatprep.subr.bf16.mxu0 %v2577_v36 }
  0xb7   :  { %2381 = vmatpush3.bf16.msra.mxu0 %v2579_v14 }
  0xb8   :  { %2382 = vmatprep.subr.bf16.mxu0 %v2581_v38 }
  0xbb   :  { %2383 = vmatpush3.bf16.msra.mxu0 %v2583_v41 }
  0xbc   :  { %2384 = vmatprep.subr.bf16.mxu0 %v2585_v43 }
  0xbf   :  { %2385 = vmatpush3.bf16.msra.mxu0 %v2587_v47 }
  0xc0   :  { %2414 = vmatprep.subr.bf16.mxu0 %v2589_v51 }
 0x112   :  { %v2289_v32 = vpop.f32.mrf.mxu1 }
 0x114   :  { %v2290_v53 = vpop.f32.mrf.mxu1 }
 0x115   :  { %v2291_v55 = vadd.f32 %v2290_v53, %v2289_v32 }
 0x116   :  { %v2292_v56 = vpop.f32.mrf.mxu1 }
 0x118   :  { %v2293_v15 = vpop.f32.mrf.mxu1 }
 0x122   :  { %v2267_v62 = vpop.f32.mrf.mxu0 }
 0x124   :  { %v2268_v0 = vpop.f32.mrf.mxu0 }
 0x125   :  { %v2269_v7 = vadd.f32 %v2268_v0, %v2267_v62 }
 0x126   :  { %v2270_v1 = vpop.f32.mrf.mxu0 }
 0x127   :  { %v925_v8 = vadd.f32 %v2291_v55, %v2269_v7 }
 0x128   :  { %v2271_v2 = vpop.f32.mrf.mxu0 }
 0x132   :  { %v2333_v3 = vpop.f32.mrf.mxu1 }
 0x134   :  { %v2334_v4 = vpop.f32.mrf.mxu1 }
 0x135   :  { %v2335_v11 = vadd.f32 %v2334_v4, %v2333_v3 }
 0x136   :  { %v2336_v5 = vpop.f32.mrf.mxu1 }
 0x138   :  { %v2337_v6 = vpop.f32.mrf.mxu1 }
 0x142   :  { %v2311_v54 = vpop.f32.mrf.mxu0 }
 0x144   :  { %v2312_v13 = vpop.f32.mrf.mxu0 }
 0x145   :  { %v2313_v39 = vadd.f32 %v2312_v13, %v2311_v54 }
 0x146   :  { %v2314_v45 = vpop.f32.mrf.mxu0 }
 0x147   :  { %v965_v10 = vadd.f32 %v2313_v39, %v925_v8 }
 0x148   :  { %v2315_v63 = vpop.f32.mrf.mxu0 }
 0x149   :  { %v1005_v12 = vadd.f32 %v2335_v11, %v965_v10 }
 0x162   :  { %v1044_v49 = vpop.f32.mrf.mxu0 }
 0x163   :  { %v2902_v17 = vadd.f32 %v1044_v49, %v1005_v12 }
 0x164   :  { %v2463_v18 = vpop.f32.mrf.mxu0 }
 0x165   :  { %vm1057_vm13 = vcmp.ge.f32.partialorder %v2902_v17, -2.2  ;;  %vm1060_vm14 = vcmp.ge.f32.partialorder %v2902_v17, -1.8  ;;  %vm1063_vm15 = vcmp.ge.f32.partialorder %v2902_v17, -1.4 }
 0x166   :  { %v1047_v22 = vpop.f32.mrf.mxu0  ;;  %v2157_v29 = vsel %vm1057_vm13, 1.0, %v2736_v33  ;;  %v2158_v20 = vsel %vm1060_vm14, 1.0, %v2736_v33  ;;  %v2159_v23 = vsel %vm1063_vm15, 1.0, %v2736_v33  ;;  %vm1066_vm0 = vcmp.ge.f32.partialorder %v2902_v17, -1.0 }
 0x167   :  { %v2160_v24 = vsel %vm1066_vm0, 1.0, %v2736_v33  ;;  %vm1069_vm1 = vcmp.ge.f32.partialorder %v2902_v17, -0.6  ;;  %v1093_v25 = vsub.f32 %v2157_v29, %v2158_v20  ;;  %v1094_v27 = vsub.f32 %v2158_v20, %v2159_v23 }
 0x168   :  { %v2464_v26 = vpop.f32.mrf.mxu0  ;;  %v2161_v16 = vsel %vm1069_vm1, 1.0, %v2736_v33  ;;  %v2169_v28 = vadd.f32 2.2, %v2902_v17  ;;  %v1107_v9 = vsub.f32 -1.4, %v2902_v17  ;;  %v1095_v30 = vsub.f32 %v2159_v23, %v2160_v24 }
 0x169   :  { %v2170_v31 = vadd.f32 1.8, %v2902_v17  ;;  %v1114_v34 = vsub.f32 -1.0, %v2902_v17  ;;  %v2171_v35 = vadd.f32 1.4, %v2902_v17  ;;  %v1096_v36 = vsub.f32 %v2160_v24, %v2161_v16 }
 0x16a   :  { %v1105_v21 = vmul.f32 2.5, %v2169_v28  ;;  %v1108_v14 = vmul.f32 2.5, %v1107_v9  ;;  %v1121_v37 = vsub.f32 -0.6, %v2902_v17  ;;  %v1174_v47 = vmul.f32 1.25, %v2169_v28 }
 0x16b   :  { %v1112_v38 = vmul.f32 2.5, %v2170_v31  ;;  %v1115_v40 = vmul.f32 2.5, %v1114_v34  ;;  %v1119_v41 = vmul.f32 2.5, %v2171_v35  ;;  %v1176_v52 = vmul.f32 1.25, %v1114_v34 }
 0x16c   :  { %v1106_v42 = vmul.f32 %v1105_v21, %v1093_v25  ;;  %v1109_v43 = vmul.f32 %v1108_v14, %v1094_v27  ;;  %v1122_v44 = vmul.f32 2.5, %v1121_v37  ;;  %v1179_v55 = vmul.f32 1.25, %v2170_v31 }
 0x16d   :  { %v1113_v50 = vmul.f32 %v1112_v38, %v1094_v27  ;;  %v1116_v51 = vmul.f32 %v1115_v40, %v1095_v30  ;;  %v1120_v19 = vmul.f32 %v1119_v41, %v1095_v30  ;;  %v1181_v56 = vmul.f32 1.25, %v1121_v37 }
 0x16e   :  { %v1110_v32 = vadd.f32 %v1109_v43, %v1106_v42  ;;  %v1123_v53 = vmul.f32 %v1122_v44, %v1096_v36  ;;  %vm1072_vm2 = vcmp.ge.f32.partialorder %v2902_v17, -0.2  ;;  %vm1075_vm3 = vcmp.ge.f32.partialorder %v2902_v17, 0.2 }
 0x16f   :  { %v1117_v15 = vadd.f32 %v1116_v51, %v1113_v50  ;;  %v2923_v48 = vadd.f32 1.0, %v2902_v17  ;;  %v2162_v59 = vsel %vm1072_vm2, 1.0, %v2736_v33  ;;  %v2163_v60 = vsel %vm1075_vm3, 1.0, %v2736_v33 }
 0x170   :  { %v1124_v57 = vadd.f32 %v1123_v53, %v1120_v19  ;;  %v1175_v58 = vmul.f32 %v1174_v47, %v1110_v32  ;;  %v1219_v62 = vmul.f32 0.8333333, %v2169_v28  ;;  %v1097_v0 = vsub.f32 %v2161_v16, %v2162_v59 }
 0x171   :  { %v1177_v46 = vmul.f32 %v1176_v52, %v1117_v15  ;;  %v1180_v61 = vmul.f32 %v1179_v55, %v1117_v15  ;;  %v1126_v2 = vmul.f32 2.5, %v2923_v48  ;;  %v1128_v3 = vsub.f32 -0.2, %v2902_v17 }
 0x172   :  { %v1182_v1 = vmul.f32 %v1181_v56, %v1124_v57  ;;  %v2930_v4 = vadd.f32 0.6, %v2902_v17  ;;  %v1221_v6 = vmul.f32 0.8333333, %v1121_v37  ;;  %v2932_v54 = vsub.f32 %v2162_v59, %v2163_v60 }
 0x173   :  { %v1178_v5 = vadd.f32 %v1177_v46, %v1175_v58  ;;  %v1135_v13 = vsub.f32 0.2, %v2902_v17  ;;  %v1127_v63 = vmul.f32 %v1126_v2, %v1096_v36  ;;  %v1129_v7 = vmul.f32 2.5, %v1128_v3 }
 0x174   :  { %v1183_v45 = vadd.f32 %v1182_v1, %v1180_v61  ;;  %v1133_v39 = vmul.f32 2.5, %v2930_v4  ;;  %v1184_v11 = vmul.f32 1.25, %v2171_v35  ;;  %v1189_v22 = vmul.f32 1.25, %v2923_v48 }
 0x175   :  { %v1220_v8 = vmul.f32 %v1219_v62, %v1178_v5  ;;  %v1136_v10 = vmul.f32 2.5, %v1135_v13  ;;  %v1130_v49 = vmul.f32 %v1129_v7, %v1097_v0  ;;  %v1186_v23 = vmul.f32 1.25, %v1128_v3  ;;  %v2591_v5 = vld [vmem:[#allocation7 + $0x1b8] sm:$0xff]  }
 0x176   :  { %v1222_v12 = vmul.f32 %v1221_v6, %v1183_v45  ;;  %v1134_v18 = vmul.f32 %v1133_v39, %v1097_v0  ;;  %v1185_v20 = vmul.f32 %v1184_v11, %v1124_v57  ;;  %v1191_v24 = vmul.f32 1.25, %v1135_v13 }
 0x177   :  { %v1137_v29 = vmul.f32 %v1136_v10, %v2932_v54  ;;  %v1131_v26 = vadd.f32 %v1130_v49, %v1127_v63  ;;  %v1229_v16 = vmul.f32 0.8333333, %v2171_v35  ;;  %vm1078_vm4 = vcmp.ge.f32.partialorder %v2902_v17, 0.6 }
 0x178   :  { %v1223_v25 = vadd.f32 %v1222_v12, %v1220_v8  ;;  %v1224_v28 = vmul.f32 0.8333333, %v2170_v31  ;;  %v2164_v9 = vsel %vm1078_vm4, 1.0, %v2736_v33  ;;  %vm1081_vm5 = vcmp.ge.f32.partialorder %v2902_v17, 1.0  ;;  %v2593_v8 = vld [vmem:[#allocation7 + $0x1f0] sm:$0xff]  }
 0x179   :  { %v2939_v27 = vadd.f32 %v1137_v29, %v1134_v18  ;;  %v1187_v34 = vmul.f32 %v1186_v23, %v1131_v26  ;;  %v1190_v36 = vmul.f32 %v1189_v22, %v1131_v26  ;;  %v2165_v21 = vsel %vm1081_vm5, 1.0, %v2736_v33 }
 0x17a   :  { %v1260_v30 = vpack.c.bf16 %v1223_v25, %v1223_v25  ;;  %v1226_v37 = vmul.f32 0.8333333, %v1128_v3  ;;  %vm1084_vm6 = vcmp.ge.f32.partialorder %v2902_v17, 1.4  ;;  %vm1087_vm7 = vcmp.ge.f32.partialorder %v2902_v17, 1.8 }
 0x17b   :  { %v1192_v14 = vmul.f32 %v1191_v24, %v2939_v27  ;;  %v1188_v35 = vadd.f32 %v1187_v34, %v1185_v20  ;;  %v1225_v38 = vmul.f32 %v1224_v28, %v1183_v45  ;;  %v2166_v31 = vsel %vm1084_vm6, 1.0, %v2736_v33  ;;  %v2595_v20 = vld [vmem:[#allocation7 + $0x1b0] sm:$0xff]  }
 0x17c   :  { %1876 = vmatprep.mubr.bf16.mxu1 %v1260_v30  ;;  %v2949_v40 = vsel %vm1087_vm7, 1.0, %v2736_v33  ;;  %v1231_v42 = vmul.f32 0.8333333, %v1135_v13  ;;  %v2953_v43 = vsub.f32 %v2163_v60, %v2164_v9  ;;  %v1100_v44 = vsub.f32 %v2164_v9, %v2165_v21  ;;  %v2597_v30 = vld [vmem:[#allocation7 + $0x1e8] sm:$0xff]  }
 0x17d   :  { %v2951_v41 = vadd.f32 %v1192_v14, %v1190_v36  ;;  %v1230_v47 = vmul.f32 %v1229_v16, %v1188_v35  ;;  %v1227_v50 = vmul.f32 %v1226_v37, %v1188_v35  ;;  %v1101_v51 = vsub.f32 %v2165_v21, %v2166_v31 }
 0x17e   :  { %v2956_v19 = vsub.f32 %v2166_v31, %v2949_v40  ;;  %v2175_v32 = vadd.f32 -0.2, %v2902_v17  ;;  %v2961_v53 = vsub.f32 1.0, %v2902_v17  ;;  %v2964_v55 = vadd.f32 -0.6, %v2902_v17  ;;  %v2599_v31 = vld [vmem:[#allocation7 + $0x1a8] sm:$0xff]  }
 0x17f   :  { %v1232_v52 = vmul.f32 %v1231_v42, %v2951_v41  ;;  %v1228_v56 = vadd.f32 %v1227_v50, %v1225_v38  ;;  %v2967_v15 = vsub.f32 1.4, %v2902_v17  ;;  %v2970_v57 = vadd.f32 -1.0, %v2902_v17 }
 0x180   :  { %v1163_v58 = vsub.f32 1.8, %v2902_v17  ;;  %v1147_v60 = vmul.f32 2.5, %v2175_v32  ;;  %v1150_v46 = vmul.f32 2.5, %v2961_v53  ;;  %v1154_v61 = vmul.f32 2.5, %v2964_v55 }
 0x181   :  { %v1233_v59 = vadd.f32 %v1232_v52, %v1230_v47  ;;  %v1261_v62 = vpack.c.bf16 %v1228_v56, %v1228_v56  ;;  %v1157_v0 = vmul.f32 2.5, %v2967_v15  ;;  %v1161_v1 = vmul.f32 2.5, %v2970_v57 }
 0x182   :  { %v1164_v2 = vmul.f32 2.5, %v1163_v58  ;;  %v1148_v6 = vmul.f32 %v1147_v60, %v2953_v43  ;;  %v1151_v13 = vmul.f32 %v1150_v46, %v1100_v44  ;;  %v1155_v45 = vmul.f32 %v1154_v61, %v1100_v44  ;;  %v2603_v60 = vld [vmem:[#allocation7 + $0x1a0] sm:$0xff]   ;;  %v2605_v61 = vld [vmem:[#allocation7 + $0x1d8] sm:$0xff]  }
 0x183   :  { %v1262_v3 = vpack.c.bf16 %v1233_v59, %v1233_v59  ;;  %v1158_v63 = vmul.f32 %v1157_v0, %v1101_v51  ;;  %v1162_v7 = vmul.f32 %v1161_v1, %v1101_v51  ;;  %v1204_v11 = vmul.f32 1.25, %v2175_v32  ;;  %v2601_v51 = vld [vmem:[#allocation7 + $0x1e0] sm:$0xff]  }
 0x184   :  { %v1165_v39 = vmul.f32 %v1164_v2, %v2956_v19  ;;  %v1152_v10 = vadd.f32 %v1151_v13, %v1148_v6  ;;  %v1206_v12 = vmul.f32 1.25, %v2967_v15  ;;  %v1209_v22 = vmul.f32 1.25, %v2964_v55 }
 0x185   :  { %1916 = vmatprep.mubr.bf16.mxu0 %v1262_v3  ;;  %v1159_v49 = vadd.f32 %v1158_v63, %v1155_v45  ;;  %v1211_v29 = vmul.f32 1.25, %v1163_v58  ;;  %v2156_v24 = vmul.f32 -1.442695, %v2902_v17  ;;  %v2983_v25 = vadd.f32 0.2, %v2902_v17  ;;  %v2609_v63 = vld [vmem:[#allocation7 + $0x1d0] sm:$0xff]  }
 0x186   :  { %1917 = vmatmul.mubr.bf16.vlgmr.msra.gmra.mxu0 %v1261_v62  ;;  %v1166_v18 = vadd.f32 %v1165_v39, %v1162_v7  ;;  %v1205_v23 = vmul.f32 %v1204_v11, %v1152_v10  ;;  %v2986_v26 = vsub.f32 0.6, %v2902_v17  ;;  %vm1090_vm8 = vcmp.ge.f32.partialorder %v2902_v17, 2.2 }
 0x187   :  { %2415 = vmatpush3.bf16.msra.mxu0 %v2591_v5  ;;  %v1207_v16 = vmul.f32 %v1206_v12, %v1159_v49  ;;  %v1210_v28 = vmul.f32 %v1209_v22, %v1159_v49  ;;  %2641 = vpow2.f32 %v2156_v24  ;;  %v1140_v34 = vmul.f32 2.5, %v2983_v25 }
 0x188   :  { %v1212_v9 = vmul.f32 %v1211_v29, %v1166_v18  ;;  %2416 = vmatprep.subr.bf16.mxu0 %v2593_v8  ;;  %v1143_v36 = vmul.f32 2.5, %v2986_v26  ;;  %v1249_v37 = vmul.f32 0.8333333, %v2175_v32  ;;  %v1251_v35 = vmul.f32 0.8333333, %v1163_v58 }
 0x189   :  { %v2991_v21 = vadd.f32 %v1207_v16, %v1205_v23  ;;  %v2168_v38 = vsel %vm1090_vm8, 1.0, %v2736_v33  ;;  %v1141_v42 = vmul.f32 %v1140_v34, %v2932_v54  ;;  %v1234_v52 = vmul.f32 0.8333333, %v2923_v48 }
 0x18a   :  { %v1213_v14 = vadd.f32 %v1212_v9, %v1210_v28  ;;  %v1144_v44 = vmul.f32 %v1143_v36, %v2953_v43  ;;  %v1103_v56 = vsub.f32 %v2949_v40, %v2168_v38  ;;  %v2178_v32 = vadd.f32 -1.4, %v2902_v17  ;;  %v2615_v9 = vld [vmem:[#allocation7 + $0x188] sm:$0xff]  }
 0x18b   :  { %2417 = vmatpush3.bf16.msra.mxu0 %v2595_v20  ;;  %v1250_v47 = vmul.f32 %v1249_v37, %v2991_v21  ;;  %v1170_v58 = vsub.f32 2.2, %v2902_v17  ;;  %v3002_v54 = vmul.f32 %v1234_v52, %v2951_v41  ;;  %v1214_v48 = vmul.f32 1.25, %v2970_v57  ;;  %v2607_v41 = vld [vmem:[#allocation7 + $0x198] sm:$0xff]   ;;  %v2610_v52 = vld [vmem:[#allocation7 + $0x170] sm:$0xff]  }
 0x18c   :  { %v1252_v50 = vmul.f32 %v1251_v35, %v1213_v14  ;;  %2418 = vmatprep.subr.bf16.mxu0 %v2597_v30  ;;  %v1145_v46 = vadd.f32 %v1144_v44, %v1141_v42  ;;  %v1168_v62 = vmul.f32 2.5, %v2178_v32  ;;  %v1199_v40 = vmul.f32 1.25, %v2983_v25  ;;  %v2617_v30 = vld [vmem:[#allocation7 + $0x1c0] sm:$0xff]  }
 0x18d   :  { %v1171_v0 = vmul.f32 2.5, %v1170_v58  ;;  %v1201_v1 = vmul.f32 1.25, %v2961_v53  ;;  %v1215_v5 = vmul.f32 %v1214_v48, %v1166_v18  ;;  %v1254_v6 = vmul.f32 0.8333333, %v2964_v55  ;;  %v2613_v55 = vld [vmem:[#allocation7 + $0x1c8] sm:$0xff]   ;;  %v2619_v35 = vld [vmem:[#allocation7 + $0x180] sm:$0xff]  }
 0x18e   :  { %v1253_v59 = vadd.f32 %v1252_v50, %v1250_v47  ;;  %v1169_v2 = vmul.f32 %v1168_v62, %v2956_v19  ;;  %v1200_v45 = vmul.f32 %v1199_v40, %v1145_v46  ;;  %v1216_v39 = vmul.f32 1.25, %v1170_v58  ;;  %v2611_v19 = vld [vmem:[#allocation7 + $0x190] sm:$0xff]   ;;  %v2608_v50 = vld [vmem:[#allocation7 + $0x138] sm:$0xff]   ;;  %v2618_v32 = vld [vmem:[#allocation7 + $0x160] sm:$0xff]  }
 0x18f   :  { %2419 = vmatpush3.bf16.msra.mxu0 %v2599_v31  ;;  %v1172_v3 = vmul.f32 %v1171_v0, %v1103_v56  ;;  %v1202_v13 = vmul.f32 %v1201_v1, %v1152_v10  ;;  %v1255_v57 = vmul.f32 %v1254_v6, %v1213_v14  ;;  %v1194_v49 = vmul.f32 1.25, %v2930_v4  ;;  %v2626_v0 = vld [vmem:[#allocation7 + $0x108] sm:$0xff]   ;;  %v2627_v48 = vld [vmem:[#allocation7 + $0x140] sm:$0xff]   ;;  %v2630_v6 = vld [vmem:[#allocation7 + $0x230] sm:$0xff]  }
 0x190   :  { %v1266_v43 = vpack.c.bf16 %v1253_v59, %v1253_v59  ;;  %2420 = vmatprep.subr.bf16.mxu0 %v2601_v51  ;;  %v1196_v18 = vmul.f32 1.25, %v2986_v26  ;;  %v1256_v10 = vmul.f32 0.8333333, %v1170_v58  ;;  %v1244_v24 = vmul.f32 0.8333333, %v2983_v25  ;;  %v2616_v59 = vld [vmem:[#allocation7 + $0x128] sm:$0xff]  }
 0x191   :  { %v1173_v7 = vadd.f32 %v1172_v3, %v1169_v2  ;;  %v1203_v22 = vadd.f32 %v1202_v13, %v1200_v45  ;;  %v1195_v20 = vmul.f32 %v1194_v49, %v2939_v27  ;;  %v1246_v16 = vmul.f32 0.8333333, %v2967_v15  ;;  %v2620_v58 = vld [vmem:[#allocation7 + $0x120] sm:$0xff]   ;;  %v2629_v3 = vld [vmem:[#allocation7 + $0x238] sm:$0xff]   ;;  %v2634_v13 = vld [vmem:[#allocation7 + $0x210] sm:$0xff]  }
 0x192   :  { %1996 = vmatprep.mubr.bf16.mxu0 %v1266_v43  ;;  %v1197_v23 = vmul.f32 %v1196_v18, %v1145_v46  ;;  %v1239_v27 = vmul.f32 0.8333333, %v2930_v4  ;;  %v1241_v38 = vmul.f32 0.8333333, %v2961_v53  ;;  %v2612_v4 = vld [vmem:[#allocation7 + $0x130] sm:$0xff]   ;;  %v2614_v53 = vld [vmem:[#allocation7 + $0x168] sm:$0xff]  }
 0x193   :  { %2421 = vmatpush3.bf16.msra.mxu0 %v2603_v60  ;;  %v1217_v11 = vmul.f32 %v1216_v39, %v1173_v7  ;;  %v1245_v34 = vmul.f32 %v1244_v24, %v1203_v22  ;;  %v1247_v36 = vmul.f32 %v1246_v16, %v2991_v21  ;;  %v2621_v60 = vld [vmem:[#allocation7 + $0x158] sm:$0xff]   ;;  %v2623_v46 = vld [vmem:[#allocation7 + $0x150] sm:$0xff]   ;;  %v1236_v62 = vmul.f32 0.8333333, %v2986_v26  ;;  %v2628_v1 = vld [vmem:[#allocation7 + $0x100] sm:$0xff]  }
 0x194   :  { %2422 = vmatprep.subr.bf16.mxu0 %v2605_v61  ;;  %v2642_v8 = vpop.eup %2641  ;;  %v1198_v37 = vadd.f32 %v1197_v23, %v1195_v20  ;;  %v1242_v31 = vmul.f32 %v1241_v38, %v1203_v22  ;;  %v2624_v43 = vld [vmem:[#allocation7 + $0x110] sm:$0xff]   ;;  %v2625_v61 = vld [vmem:[#allocation7 + $0x148] sm:$0xff]  }
 0x195   :  { %v1053_v12 = vadd.f32 1.0, %v2642_v8  ;;  %v1218_v29 = vadd.f32 %v1217_v11, %v1215_v5  ;;  %v1248_v25 = vadd.f32 %v1247_v36, %v1245_v34  ;;  %v2631_v26 = vld [vmem:[#allocation7 + $0x228] sm:$0xff]  }
 0x196   :  { %v1240_v15 = vmul.f32 %v1239_v27, %v1198_v37  ;;  %v1237_v40 = vmul.f32 %v1236_v62, %v1198_v37  ;;  %v2635_v45 = vld [vmem:[#allocation7 + $0x208] sm:$0xff]  }
 0x197   :  { %2423 = vmatpush3.bf16.msra.mxu0 %v2607_v41  ;;  %2643 = vrcp.f32 %v1053_v12  ;;  %v1257_v28 = vmul.f32 %v1256_v10, %v1218_v29  ;;  %v1265_v42 = vpack.c.bf16 %v1248_v25, %v1248_v25  ;;  %v2632_v41 = vld [vmem:[#allocation7 + $0x220] sm:$0xff]  }
 0x198   :  { %2424 = vmatprep.subr.bf16.mxu0 %v2609_v63  ;;  %v1243_v47 = vadd.f32 %v1242_v31, %v1240_v15  ;;  %v1238_v2 = vadd.f32 %v1237_v40, %v3002_v54  ;;  %v2633_v54 = vld [vmem:[#allocation7 + $0x218] sm:$0xff]   ;;  %v2636_v63 = vld [vmem:[#allocation7 + $0x200] sm:$0xff]  }
 0x199   :  { %v3015_v14 = vadd.f32 %v1257_v28, %v1255_v57 }
 0x19a   :  { %v1264_v56 = vpack.c.bf16 %v1243_v47, %v1243_v47  ;;  %v1263_v5 = vpack.c.bf16 %v1238_v2, %v1238_v2 }
 0x19b   :  { %2425 = vmatpush3.bf16.msra.mxu0 %v2611_v19  ;;  %v1267_v7 = vpack.c.bf16 %v3015_v14, %v3015_v14 }
 0x19c   :  { %2426 = vmatprep.subr.bf16.mxu0 %v2613_v55 }
 0x19f   :  { %2427 = vmatpush3.bf16.msra.mxu0 %v2615_v9 }
 0x1a0   :  { %2428 = vmatprep.subr.bf16.mxu0 %v2617_v30 }
 0x1a3   :  { %2429 = vmatpush3.bf16.msra.mxu0 %v2619_v35 }
 0x1a4   :  { %v2644_v44 = vpop.eup %2643 }
 0x1a5   :  { %v1056_v21 = vmul.f32 %v2644_v44, %v2902_v17  ;;  %v2622_v17 = vld [vmem:[#allocation7 + $0x118] sm:$0xff]  }
 0x1a6   :  { %1997 = vmatmul.mubr.bf16.vlgmr.msra.gmra.mxu0 %v1265_v42 }
 0x1a7   :  { %v1259_v51 = vpack.c.bf16 %v1056_v21, %v1056_v21 }
 0x1a9   :  { %1877 = vmatmul.mubr.bf16.vlgmr.msra.gmra.mxu1 %v1259_v51 }
 0x1aa   :  { %2393 = vmatpush3.bf16.msra.mxu1 %v2608_v50  ;;  %1956 = vmatprep.mubr.bf16.mxu1 %v1264_v56 }
 0x1ab   :  { %2394 = vmatprep.subr.bf16.mxu1 %v2610_v52 }
 0x1ae   :  { %2395 = vmatpush3.bf16.msra.mxu1 %v2612_v4 }
 0x1af   :  { %2396 = vmatprep.subr.bf16.mxu1 %v2614_v53 }
 0x1b2   :  { %2397 = vmatpush3.bf16.msra.mxu1 %v2616_v59 }
 0x1b3   :  { %2398 = vmatprep.subr.bf16.mxu1 %v2618_v32 }
 0x1b6   :  { %2399 = vmatpush3.bf16.msra.mxu1 %v2620_v58 }
 0x1b7   :  { %2400 = vmatprep.subr.bf16.mxu1 %v2621_v60 }
 0x1ba   :  { %2401 = vmatpush3.bf16.msra.mxu1 %v2622_v17 }
 0x1bb   :  { %2402 = vmatprep.subr.bf16.mxu1 %v2623_v46 }
 0x1be   :  { %2403 = vmatpush3.bf16.msra.mxu1 %v2624_v43 }
 0x1bf   :  { %2404 = vmatprep.subr.bf16.mxu1 %v2625_v61 }
 0x1c2   :  { %2405 = vmatpush3.bf16.msra.mxu1 %v2626_v0 }
 0x1c3   :  { %2406 = vmatprep.subr.bf16.mxu1 %v2627_v48 }
 0x1c6   :  { %2407 = vmatpush3.bf16.msra.mxu1 %v2628_v1 }
 0x1c7   :  { %2465 = vmatprep.subr.bf16.mxu1 %v2736_v33 }
 0x1c9   :  { %1957 = vmatmul.mubr.bf16.vlgmr.msra.gmra.mxu1 %v1263_v5 }
 0x1ca   :  { %2466 = vmatpush3.bf16.msra.mxu1 %v2629_v3  ;;  %2481 = vmatprep.mubr.msk.bf16.mxu1 %vm2737_vm12, %v2736_v33 }
 0x1cb   :  { %2467 = vmatprep.subr.bf16.mxu1 %v2736_v33 }
 0x1ce   :  { %2468 = vmatpush3.bf16.msra.mxu1 %v2630_v6 }
 0x1cf   :  { %2469 = vmatprep.subr.bf16.mxu1 %v2736_v33 }
 0x1d2   :  { %2470 = vmatpush3.bf16.msra.mxu1 %v2631_v26 }
 0x1d3   :  { %2471 = vmatprep.subr.bf16.mxu1 %v2736_v33 }
 0x1d6   :  { %2472 = vmatpush3.bf16.msra.mxu1 %v2632_v41 }
 0x1d7   :  { %2473 = vmatprep.subr.bf16.mxu1 %v2736_v33 }
 0x1da   :  { %2474 = vmatpush3.bf16.msra.mxu1 %v2633_v54 }
 0x1db   :  { %2475 = vmatprep.subr.bf16.mxu1 %v2736_v33 }
 0x1de   :  { %2476 = vmatpush3.bf16.msra.mxu1 %v2634_v13 }
 0x1df   :  { %2477 = vmatprep.subr.bf16.mxu1 %v2736_v33 }
 0x1e2   :  { %2478 = vmatpush3.bf16.msra.mxu1 %v2635_v45 }
 0x1e3   :  { %2479 = vmatprep.subr.bf16.mxu1 %v2736_v33 }
 0x1e6   :  { %2480 = vmatpush3.bf16.msra.mxu1 %v2636_v63 }
 0x1e9   :  { %2482 = vmatmul.mubr.bf16.vlgmr.msra.gmra.mxu1 %v1267_v7 }
 0x246   :  { %v2386_v39 = vpop.f32.mrf.mxu0 }
 0x248   :  { %v2387_v57 = vpop.f32.mrf.mxu0 }
 0x249   :  { %v2388_v8 = vadd.f32 %v2387_v57, %v2386_v39 }
 0x24a   :  { %v2389_v11 = vpop.f32.mrf.mxu0 }
 0x24c   :  { %v2390_v12 = vpop.f32.mrf.mxu0 }
 0x266   :  { %v2430_v49 = vpop.f32.mrf.mxu0 }
 0x268   :  { %v2431_v19 = vpop.f32.mrf.mxu0 }
 0x269   :  { %v2364_v22 = vpop.f32.mrf.mxu1  ;;  %v2432_v30 = vadd.f32 %v2431_v19, %v2430_v49 }
 0x26a   :  { %v2433_v18 = vpop.f32.mrf.mxu0 }
 0x26b   :  { %v2365_v29 = vpop.f32.mrf.mxu1 }
 0x26c   :  { %v2434_v55 = vpop.f32.mrf.mxu0  ;;  %v2366_v23 = vadd.f32 %v2365_v29, %v2364_v22 }
 0x26d   :  { %v2367_v10 = vpop.f32.mrf.mxu1 }
 0x26e   :  { %v1919_v16 = vadd.f32 %v2388_v8, %v2366_v23 }
 0x26f   :  { %v2368_v20 = vpop.f32.mrf.mxu1 }
 0x289   :  { %v2408_v33 = vpop.f32.mrf.mxu1 }
 0x28b   :  { %v2409_v24 = vpop.f32.mrf.mxu1 }
 0x28c   :  { %v2410_v28 = vadd.f32 %v2409_v24, %v2408_v33 }
 0x28d   :  { %v2411_v9 = vpop.f32.mrf.mxu1 }
 0x28e   :  { %v1959_v34 = vadd.f32 %v2410_v28, %v1919_v16 }
 0x28f   :  { %v2412_v36 = vpop.f32.mrf.mxu1 }
 0x290   :  { %v1999_v14 = vadd.f32 %v2432_v30, %v1959_v34 }
 0x2a9   :  { %v2038_v37 = vpop.f32.mrf.mxu1 }
 0x2aa   :  { %v2039_v35 = vadd.f32 %v2038_v37, %v1999_v14 }
 0x2ab   :  { %v2483_v27 = vpop.f32.mrf.mxu1 }
 0x2ac   :  { %2044 = vst [vmem:[#allocation8] sm:$0xff] %v2039_v35 }
 0x2ad   :  { %v2041_v38 = vpop.f32.mrf.mxu1 }
 0x2ae   :  { %2716 = shalt.err (!%p2713_p5)
}
 0x2af   :  { %2054 = dma.vmem_to_hbm [thread:$0]  %s2052_s2, 128, %s3040_s3, [#allocation4]   ;;  %v2484_v25 = vpop.f32.mrf.mxu1 }
 0x2b0   :  { %2729 = dma.done.wait [#allocation4], 128  }
 0x2b1   :  { %2730 = vsyncadd [#allocation4], 4294967168 }
 0x2b2   :  { %2058 = vsyncpa [#allocation3], 1 }
 0x2b3   :  { %2059 = vsyncpa [#allocation6], 1 }
 0x2b4   :  { %2060 = vsyncpa [#allocation4], 1 }

</bundles_post_ra>
